<compile_context>
chip_gen: v7x
topology: tpu7x:2x2x1
jax: 0.10.0
libtpu: 0.0.40
codegen_flags: <defaults>
</compile_context>

<pallas_src>
import functools

import jax
import jax.numpy as jnp
from jax.experimental import pallas as pl
from jax.experimental.pallas import tpu as pltpu

IN_C = 82          # in_channels_xy
IN_PAD = 128       # lane-padded input channels
W = 256            # hidden width
HALF = W // 2      # 128

VMEM_LIMIT_BYTES = 48 * 1024 * 1024   # > 16/32 MiB defaults, < 64 MiB v7x physical


def _round_up(n, m):
    return ((n + m - 1) // m) * m


def _select_tile(B, max_tile):
    """Pick the batch tile.

    Prefers: (1) >= 2 grid steps when the batch allows it (v7x has two
    TensorCores and the batch grid is the only parallel axis), then
    (2) minimal (padded rows + per-step overhead) cost, then (3) bigger tiles.
    """
    B8 = _round_up(max(B, 1), 8)
    cands = [t for t in (256, 512, 1024, 2048) if t <= max_tile] or [max_tile]
    if B8 <= cands[0]:
        return B8                       # tiny batch: one minimal tile
    best_key, best_t = None, None
    for t in cands:
        steps = (B8 + t - 1) // t
        # padded rows of work + per-step overhead expressed in row-equivalents
        cost = steps * (t + 256)
        key = (0 if steps >= 2 else 1, cost, -t)
        if best_key is None or key < best_key:
            best_key, best_t = key, t
    return best_t


def nerf_kernel(x_ref, w0, w4a, wsq, b_all, wf2, bf2, wrgb, brgb,
                out_ref, xpad):
    """One batch tile of the full NeRF MLP forward.

    x_ref  : (TB, IN_C)   f32  embedded position (streamed from HBM)
    w0     : (IN_PAD, W)  bf16, rows [IN_C:) zero
    w4a    : (IN_PAD, W)  bf16, rows [IN_C:) zero (skip-connection input part)
    wsq    : (8, W, W)    bf16  [w1, w2, w3, w4b, w5, w6, w7, wf1]
    b_all  : (9, 1, W)    f32   [b0 .. b7, bf1]
    wf2    : (W, HALF)    bf16
    bf2    : (1, HALF)    f32
    wrgb   : (1, HALF)    f32   rgb head row (VPU/XLU path, no N=1 matmul)
    brgb   : (1, 1)       f32
    out_ref: (TB, 1)      f32   gray value
    xpad   : (TB, IN_PAD) bf16  scratch: lane-padded bf16 input
    """
    # Lane-pad the input to 128 in bf16.  Pad lanes must be (re)zeroed every
    # step: the scratch persists across grid iterations and uninitialized VMEM
    # may hold NaN/Inf (0 * NaN would poison layers 0 and 4 even though the
    # matching weight rows are zero).
    xpad[:, IN_C:] = jnp.zeros((xpad.shape[0], IN_PAD - IN_C), xpad.dtype)
    xpad[:, :IN_C] = x_ref[...].astype(xpad.dtype)
    x = xpad[...]                                        # (TB, 128) bf16

    def lin(h, w, b):
        # bf16 x bf16 MXU matmul, f32 accumulate, bias add in f32
        return jnp.dot(h, w, preferred_element_type=jnp.float32) + b

    def lin_relu(h, w, b):
        return jnp.maximum(lin(h, w, b), 0.0).astype(jnp.bfloat16)

    h = lin_relu(x, w0[...], b_all[0])                   # layer 0 (82 -> 256)
    h = lin_relu(h, wsq[0], b_all[1])                    # layer 1
    h = lin_relu(h, wsq[1], b_all[2])                    # layer 2
    h = lin_relu(h, wsq[2], b_all[3])                    # layer 3
    # layer 4 (skip): cat([x, h], -1) @ W4  ==  x @ W4a + h @ W4b
    h = jnp.maximum(
        jnp.dot(x, w4a[...], preferred_element_type=jnp.float32)
        + jnp.dot(h, wsq[3], preferred_element_type=jnp.float32)
        + b_all[4], 0.0).astype(jnp.bfloat16)
    h = lin_relu(h, wsq[4], b_all[5])                    # layer 5
    h = lin_relu(h, wsq[5], b_all[6])                    # layer 6
    h = lin_relu(h, wsq[6], b_all[7])                    # layer 7

    f1 = lin(h, wsq[7], b_all[8]).astype(jnp.bfloat16)   # final1 (no act)
    f2 = jnp.maximum(lin(f1, wf2[...], bf2[...]), 0.0)   # final2, (TB,128) f32

    # rgb head (128 -> 1): VPU multiply + XLU lane reduce, f32 sigmoid.
    logit = jnp.sum(f2 * wrgb[...], axis=-1, keepdims=True) + brgb[...]
    out_ref[...] = 1.0 / (1.0 + jnp.exp(-logit))


def init_params(key):
    """Deterministic init. Weights (in, out) in bf16; biases (1, out) in f32."""
    ks = iter(jax.random.split(key, 32))

    def dense(kin, kout):
        scale = 1.0 / jnp.sqrt(jnp.float32(kin))
        w = jax.random.uniform(next(ks), (kin, kout), jnp.float32, -scale, scale)
        b = jax.random.uniform(next(ks), (1, kout), jnp.float32, -scale, scale)
        return w.astype(jnp.bfloat16), b

    p = {}
    w0, b0 = dense(IN_C, W)
    p["w0"] = jnp.zeros((IN_PAD, W), jnp.bfloat16).at[:IN_C].set(w0)
    p["b0"] = b0
    for i in (1, 2, 3):
        p[f"w{i}"], p[f"b{i}"] = dense(W, W)
    w4a, _ = dense(IN_C, W)
    w4b, b4 = dense(W, W)
    p["w4a"] = jnp.zeros((IN_PAD, W), jnp.bfloat16).at[:IN_C].set(w4a)
    p["w4b"] = w4b
    p["b4"] = b4
    for i in (5, 6, 7):
        p[f"w{i}"], p[f"b{i}"] = dense(W, W)
    p["wf1"], p["bf1"] = dense(W, W)
    p["wf2"], p["bf2"] = dense(W, HALF)
    scale = 1.0 / jnp.sqrt(jnp.float32(HALF))
    p["wrgb"] = jax.random.uniform(next(ks), (1, HALF), jnp.float32, -scale, scale)
    p["brgb"] = jax.random.uniform(next(ks), (1, 1), jnp.float32, -scale, scale)
    return p


def pack_params(p):
    """Pack params into the 8 kernel operands (stacks the eight square weights
    and the nine width-256 biases to cut pallas_call input count 23 -> 8)."""
    wsq = jnp.stack([p["w1"], p["w2"], p["w3"], p["w4b"],
                     p["w5"], p["w6"], p["w7"], p["wf1"]])       # (8, W, W) bf16
    b_all = jnp.stack([p["b0"], p["b1"], p["b2"], p["b3"], p["b4"],
                       p["b5"], p["b6"], p["b7"], p["bf1"]])     # (9, 1, W) f32
    return (p["w0"], p["w4a"], wsq, b_all,
            p["wf2"], p["bf2"], p["wrgb"], p["brgb"])


@functools.partial(jax.jit, static_argnames=("max_tile",))
def nerf_forward(x, packed, *, max_tile=2048):
    """x: (B, IN_C) float32  ->  (B, 1) float32 in (0, 1).

    `max_tile` caps the batch tile (default 2048 fits the 48 MiB VMEM budget on
    all of v5e / v6e / v7x; lower it if sharing VMEM with other fused work).
    """
    w0, w4a, wsq, b_all, wf2, bf2, wrgb, brgb = packed
    B = x.shape[0]
    tile = _select_tile(B, max_tile)
    B_pad = _round_up(B, tile)
    if B_pad != B:
        x = jnp.pad(x, ((0, B_pad - B), (0, 0)))

    plist = [w0, w4a, wsq, b_all, wf2, bf2, wrgb, brgb]

    def full_spec(arr):
        # Whole (small) weight resident in VMEM; constant block index, so the
        # pipeline fetches it once and re-uses it every grid step.
        return pl.BlockSpec(arr.shape, lambda i: (0,) * arr.ndim)

    in_specs = [pl.BlockSpec((tile, IN_C), lambda i: (i, 0))]
    in_specs += [full_spec(a) for a in plist]

    # Advisory cost estimate (MACs per row of the whole MLP).
    macs = (IN_PAD * W            # layer 0 (padded)
            + 3 * W * W           # layers 1..3
            + IN_PAD * W + W * W  # layer 4 (skip)
            + 3 * W * W           # layers 5..7
            + W * W               # final1
            + W * HALF            # final2
            + HALF)               # rgb head
    weight_bytes = sum(a.size * a.dtype.itemsize for a in plist)
    cost = pl.CostEstimate(
        flops=2 * B_pad * macs,
        transcendentals=B_pad,
        bytes_accessed=B_pad * IN_C * 4 + B_pad * 4 + weight_bytes)

    out = pl.pallas_call(
        nerf_kernel,
        out_shape=jax.ShapeDtypeStruct((B_pad, 1), jnp.float32),
        grid_spec=pltpu.PrefetchScalarGridSpec(
            num_scalar_prefetch=0,
            grid=(B_pad // tile,),
            in_specs=in_specs,
            out_specs=pl.BlockSpec((tile, 1), lambda i: (i, 0)),
            scratch_shapes=[pltpu.VMEM((tile, IN_PAD), jnp.bfloat16)],
        ),
        compiler_params=pltpu.CompilerParams(
            dimension_semantics=("parallel",),
            vmem_limit_bytes=VMEM_LIMIT_BYTES),
        cost_estimate=cost,
    )(x, *plist)
    return out[:B] if B_pad != B else out


def nerf_reference(x, p):
    """Pure-JAX f32 reference matching the PyTorch forward semantics
    (same bf16-rounded weights, upcast to f32; f32 activations)."""
    f32 = lambda a: a.astype(jnp.float32)
    xp = jnp.zeros((x.shape[0], IN_PAD), jnp.float32).at[:, :IN_C].set(x)
    h = jax.nn.relu(xp @ f32(p["w0"]) + p["b0"])
    for i in (1, 2, 3):
        h = jax.nn.relu(h @ f32(p[f"w{i}"]) + p[f"b{i}"])
    h = jax.nn.relu(xp @ f32(p["w4a"]) + h @ f32(p["w4b"]) + p["b4"])
    for i in (5, 6, 7):
        h = jax.nn.relu(h @ f32(p[f"w{i}"]) + p[f"b{i}"])
    f1 = h @ f32(p["wf1"]) + p["bf1"]
    f2 = jax.nn.relu(f1 @ f32(p["wf2"]) + p["bf2"])
    logit = jnp.sum(f2 * p["wrgb"], axis=-1, keepdims=True) + p["brgb"]
    return jax.nn.sigmoid(logit)


if __name__ == "__main__":
    key = jax.random.PRNGKey(0)
    kp, kx1, kx2 = jax.random.split(key, 3)
    params = init_params(kp)
    packed = pack_params(params)

    # Two small demo batches: B=16 (single tiny tile) and B=300 (2 grid steps
    # with batch padding) to exercise both tiling paths.
    for B, kx in ((16, kx1), (300, kx2)):
        x = jax.random.normal(kx, (B, IN_C), jnp.float32)
        out = jax.block_until_ready(nerf_forward(x, packed))
        ref = nerf_reference(x, params)
        assert out.shape == (B, 1), out.shape
        err = float(jnp.max(jnp.abs(out - ref)))
        # bf16 matmul operands / bf16 inter-layer activations, f32 accumulate
        assert err < 2e-2, f"B={B}: max err {err}"
    print("KERNEL_OK")
</pallas_src>

<mosaic_0001>
module attributes {stable_mosaic.version = 11 : i64} {
  func.func @nerf_kernel(%arg0: i32, %arg1: memref<16x82xf32, #tpu.memory_space<vmem>>, %arg2: memref<128x256xbf16, #tpu.memory_space<vmem>>, %arg3: memref<128x256xbf16, #tpu.memory_space<vmem>>, %arg4: memref<8x256x256xbf16, #tpu.memory_space<vmem>>, %arg5: memref<9x1x256xf32, #tpu.memory_space<vmem>>, %arg6: memref<256x128xbf16, #tpu.memory_space<vmem>>, %arg7: memref<1x128xf32, #tpu.memory_space<vmem>>, %arg8: memref<1x128xf32, #tpu.memory_space<vmem>>, %arg9: memref<1x1xf32, #tpu.memory_space<vmem>>, %arg10: memref<16x1xf32, #tpu.memory_space<vmem>>, %arg11: memref<16x128xbf16, #tpu.memory_space<vmem>>) attributes {dimension_semantics = [#tpu.dimension_semantics<parallel>], iteration_bounds = array<i64: 1>, scalar_prefetch = 0 : i64, scratch_operands = 1 : i64, tpu.core_type = #tpu.core_type<tc>, window_params = [{transform_indices = @transform_0, window_bounds = array<i64: 16, 82>}, {pipeline_mode = #tpu.pipeline_mode<synchronous>, transform_indices = @transform_1, window_bounds = array<i64: 128, 256>}, {pipeline_mode = #tpu.pipeline_mode<synchronous>, transform_indices = @transform_2, window_bounds = array<i64: 128, 256>}, {pipeline_mode = #tpu.pipeline_mode<synchronous>, transform_indices = @transform_3, window_bounds = array<i64: 8, 256, 256>}, {pipeline_mode = #tpu.pipeline_mode<synchronous>, transform_indices = @transform_4, window_bounds = array<i64: 9, 1, 256>}, {pipeline_mode = #tpu.pipeline_mode<synchronous>, transform_indices = @transform_5, window_bounds = array<i64: 256, 128>}, {pipeline_mode = #tpu.pipeline_mode<synchronous>, transform_indices = @transform_6, window_bounds = array<i64: 1, 128>}, {pipeline_mode = #tpu.pipeline_mode<synchronous>, transform_indices = @transform_7, window_bounds = array<i64: 1, 128>}, {pipeline_mode = #tpu.pipeline_mode<synchronous>, transform_indices = @transform_8, window_bounds = array<i64: 1, 1>}, {transform_indices = @transform_9, window_bounds = array<i64: 16, 1>}]} {
    %cst = arith.constant 0.000000e+00 : bf16
    %0 = vector.broadcast %cst : bf16 to vector<16x46xbf16>
    %c0 = arith.constant 0 : index
    %c82 = arith.constant 82 : index
    %1 = vector.load %arg11[%c0, %c82] : memref<16x128xbf16, #tpu.memory_space<vmem>>, vector<16x46xbf16>
    tpu.vector_store %arg11[%c0, %c82], %0 {strides = array<i32>} : memref<16x128xbf16, #tpu.memory_space<vmem>>, vector<16x46xbf16>,
    %c0_0 = arith.constant 0 : index
    %c0_1 = arith.constant 0 : index
    %2 = vector.load %arg1[%c0_0, %c0_1] : memref<16x82xf32, #tpu.memory_space<vmem>>, vector<16x82xf32>
    %3 = arith.truncf %2 : vector<16x82xf32> to vector<16x82xbf16>
    %c0_2 = arith.constant 0 : index
    %c0_3 = arith.constant 0 : index
    %4 = vector.load %arg11[%c0_2, %c0_3] : memref<16x128xbf16, #tpu.memory_space<vmem>>, vector<16x82xbf16>
    tpu.vector_store %arg11[%c0_2, %c0_3], %3 {strides = array<i32>} : memref<16x128xbf16, #tpu.memory_space<vmem>>, vector<16x82xbf16>,
    %c0_4 = arith.constant 0 : index
    %c0_5 = arith.constant 0 : index
    %5 = vector.load %arg11[%c0_4, %c0_5] : memref<16x128xbf16, #tpu.memory_space<vmem>>, vector<16x128xbf16>
    %c0_6 = arith.constant 0 : index
    %c0_7 = arith.constant 0 : index
    %6 = vector.load %arg2[%c0_6, %c0_7] : memref<128x256xbf16, #tpu.memory_space<vmem>>, vector<128x256xbf16>
    %c0_8 = arith.constant 0 : index
    %c0_9 = arith.constant 0 : index
    %c0_10 = arith.constant 0 : index
    %7 = vector.load %arg5[%c0_8, %c0_9, %c0_10] : memref<9x1x256xf32, #tpu.memory_space<vmem>>, vector<1x1x256xf32>
    %8 = vector.shape_cast %7 : vector<1x1x256xf32> to vector<1x256xf32>
    %cst_11 = arith.constant dense<0.000000e+00> : vector<16x256xf32>
    %9 = tpu.matmul %5, %6, %cst_11 {dimension_numbers = #tpu.dot_dimension_numbers<[1], [0], [0], [1], [0, 0, 1, 1], [], []>} : vector<16x128xbf16>, vector<128x256xbf16>, vector<16x256xf32> -> vector<16x256xf32>
    %10 = vector.broadcast %8 : vector<1x256xf32> to vector<16x256xf32>
    %11 = arith.addf %9, %10 : vector<16x256xf32>
    %cst_12 = arith.constant 0.000000e+00 : f32
    %12 = vector.broadcast %cst_12 : f32 to vector<16x256xf32>
    %13 = arith.maximumf %11, %12 : vector<16x256xf32>
    %14 = arith.truncf %13 : vector<16x256xf32> to vector<16x256xbf16>
    %c0_13 = arith.constant 0 : index
    %c0_14 = arith.constant 0 : index
    %c0_15 = arith.constant 0 : index
    %15 = vector.load %arg4[%c0_13, %c0_14, %c0_15] : memref<8x256x256xbf16, #tpu.memory_space<vmem>>, vector<1x256x256xbf16>
    %16 = vector.shape_cast %15 : vector<1x256x256xbf16> to vector<256x256xbf16>
    %c1 = arith.constant 1 : index
    %c0_16 = arith.constant 0 : index
    %c0_17 = arith.constant 0 : index
    %17 = vector.load %arg5[%c1, %c0_16, %c0_17] : memref<9x1x256xf32, #tpu.memory_space<vmem>>, vector<1x1x256xf32>
    %18 = vector.shape_cast %17 : vector<1x1x256xf32> to vector<1x256xf32>
    %cst_18 = arith.constant dense<0.000000e+00> : vector<16x256xf32>
    %19 = tpu.matmul %14, %16, %cst_18 {dimension_numbers = #tpu.dot_dimension_numbers<[1], [0], [0], [1], [0, 0, 1, 1], [], []>} : vector<16x256xbf16>, vector<256x256xbf16>, vector<16x256xf32> -> vector<16x256xf32>
    %20 = vector.broadcast %18 : vector<1x256xf32> to vector<16x256xf32>
    %21 = arith.addf %19, %20 : vector<16x256xf32>
    %cst_19 = arith.constant 0.000000e+00 : f32
    %22 = vector.broadcast %cst_19 : f32 to vector<16x256xf32>
    %23 = arith.maximumf %21, %22 : vector<16x256xf32>
    %24 = arith.truncf %23 : vector<16x256xf32> to vector<16x256xbf16>
    %c1_20 = arith.constant 1 : index
    %c0_21 = arith.constant 0 : index
    %c0_22 = arith.constant 0 : index
    %25 = vector.load %arg4[%c1_20, %c0_21, %c0_22] : memref<8x256x256xbf16, #tpu.memory_space<vmem>>, vector<1x256x256xbf16>
    %26 = vector.shape_cast %25 : vector<1x256x256xbf16> to vector<256x256xbf16>
    %c2 = arith.constant 2 : index
    %c0_23 = arith.constant 0 : index
    %c0_24 = arith.constant 0 : index
    %27 = vector.load %arg5[%c2, %c0_23, %c0_24] : memref<9x1x256xf32, #tpu.memory_space<vmem>>, vector<1x1x256xf32>
    %28 = vector.shape_cast %27 : vector<1x1x256xf32> to vector<1x256xf32>
    %cst_25 = arith.constant dense<0.000000e+00> : vector<16x256xf32>
    %29 = tpu.matmul %24, %26, %cst_25 {dimension_numbers = #tpu.dot_dimension_numbers<[1], [0], [0], [1], [0, 0, 1, 1], [], []>} : vector<16x256xbf16>, vector<256x256xbf16>, vector<16x256xf32> -> vector<16x256xf32>
    %30 = vector.broadcast %28 : vector<1x256xf32> to vector<16x256xf32>
    %31 = arith.addf %29, %30 : vector<16x256xf32>
    %cst_26 = arith.constant 0.000000e+00 : f32
    %32 = vector.broadcast %cst_26 : f32 to vector<16x256xf32>
    %33 = arith.maximumf %31, %32 : vector<16x256xf32>
    %34 = arith.truncf %33 : vector<16x256xf32> to vector<16x256xbf16>
    %c2_27 = arith.constant 2 : index
    %c0_28 = arith.constant 0 : index
    %c0_29 = arith.constant 0 : index
    %35 = vector.load %arg4[%c2_27, %c0_28, %c0_29] : memref<8x256x256xbf16, #tpu.memory_space<vmem>>, vector<1x256x256xbf16>
    %36 = vector.shape_cast %35 : vector<1x256x256xbf16> to vector<256x256xbf16>
    %c3 = arith.constant 3 : index
    %c0_30 = arith.constant 0 : index
    %c0_31 = arith.constant 0 : index
    %37 = vector.load %arg5[%c3, %c0_30, %c0_31] : memref<9x1x256xf32, #tpu.memory_space<vmem>>, vector<1x1x256xf32>
    %38 = vector.shape_cast %37 : vector<1x1x256xf32> to vector<1x256xf32>
    %cst_32 = arith.constant dense<0.000000e+00> : vector<16x256xf32>
    %39 = tpu.matmul %34, %36, %cst_32 {dimension_numbers = #tpu.dot_dimension_numbers<[1], [0], [0], [1], [0, 0, 1, 1], [], []>} : vector<16x256xbf16>, vector<256x256xbf16>, vector<16x256xf32> -> vector<16x256xf32>
    %40 = vector.broadcast %38 : vector<1x256xf32> to vector<16x256xf32>
    %41 = arith.addf %39, %40 : vector<16x256xf32>
    %cst_33 = arith.constant 0.000000e+00 : f32
    %42 = vector.broadcast %cst_33 : f32 to vector<16x256xf32>
    %43 = arith.maximumf %41, %42 : vector<16x256xf32>
    %44 = arith.truncf %43 : vector<16x256xf32> to vector<16x256xbf16>
    %c0_34 = arith.constant 0 : index
    %c0_35 = arith.constant 0 : index
    %45 = vector.load %arg3[%c0_34, %c0_35] : memref<128x256xbf16, #tpu.memory_space<vmem>>, vector<128x256xbf16>
    %cst_36 = arith.constant dense<0.000000e+00> : vector<16x256xf32>
    %46 = tpu.matmul %5, %45, %cst_36 {dimension_numbers = #tpu.dot_dimension_numbers<[1], [0], [0], [1], [0, 0, 1, 1], [], []>} : vector<16x128xbf16>, vector<128x256xbf16>, vector<16x256xf32> -> vector<16x256xf32>
    %c3_37 = arith.constant 3 : index
    %c0_38 = arith.constant 0 : index
    %c0_39 = arith.constant 0 : index
    %47 = vector.load %arg4[%c3_37, %c0_38, %c0_39] : memref<8x256x256xbf16, #tpu.memory_space<vmem>>, vector<1x256x256xbf16>
    %48 = vector.shape_cast %47 : vector<1x256x256xbf16> to vector<256x256xbf16>
    %cst_40 = arith.constant dense<0.000000e+00> : vector<16x256xf32>
    %49 = tpu.matmul %44, %48, %cst_40 {dimension_numbers = #tpu.dot_dimension_numbers<[1], [0], [0], [1], [0, 0, 1, 1], [], []>} : vector<16x256xbf16>, vector<256x256xbf16>, vector<16x256xf32> -> vector<16x256xf32>
    %50 = arith.addf %46, %49 : vector<16x256xf32>
    %c4 = arith.constant 4 : index
    %c0_41 = arith.constant 0 : index
    %c0_42 = arith.constant 0 : index
    %51 = vector.load %arg5[%c4, %c0_41, %c0_42] : memref<9x1x256xf32, #tpu.memory_space<vmem>>, vector<1x1x256xf32>
    %52 = vector.shape_cast %51 : vector<1x1x256xf32> to vector<1x256xf32>
    %53 = vector.broadcast %52 : vector<1x256xf32> to vector<16x256xf32>
    %54 = arith.addf %50, %53 : vector<16x256xf32>
    %cst_43 = arith.constant 0.000000e+00 : f32
    %55 = vector.broadcast %cst_43 : f32 to vector<16x256xf32>
    %56 = arith.maximumf %54, %55 : vector<16x256xf32>
    %57 = arith.truncf %56 : vector<16x256xf32> to vector<16x256xbf16>
    %c4_44 = arith.constant 4 : index
    %c0_45 = arith.constant 0 : index
    %c0_46 = arith.constant 0 : index
    %58 = vector.load %arg4[%c4_44, %c0_45, %c0_46] : memref<8x256x256xbf16, #tpu.memory_space<vmem>>, vector<1x256x256xbf16>
    %59 = vector.shape_cast %58 : vector<1x256x256xbf16> to vector<256x256xbf16>
    %c5 = arith.constant 5 : index
    %c0_47 = arith.constant 0 : index
    %c0_48 = arith.constant 0 : index
    %60 = vector.load %arg5[%c5, %c0_47, %c0_48] : memref<9x1x256xf32, #tpu.memory_space<vmem>>, vector<1x1x256xf32>
    %61 = vector.shape_cast %60 : vector<1x1x256xf32> to vector<1x256xf32>
    %cst_49 = arith.constant dense<0.000000e+00> : vector<16x256xf32>
    %62 = tpu.matmul %57, %59, %cst_49 {dimension_numbers = #tpu.dot_dimension_numbers<[1], [0], [0], [1], [0, 0, 1, 1], [], []>} : vector<16x256xbf16>, vector<256x256xbf16>, vector<16x256xf32> -> vector<16x256xf32>
    %63 = vector.broadcast %61 : vector<1x256xf32> to vector<16x256xf32>
    %64 = arith.addf %62, %63 : vector<16x256xf32>
    %cst_50 = arith.constant 0.000000e+00 : f32
    %65 = vector.broadcast %cst_50 : f32 to vector<16x256xf32>
    %66 = arith.maximumf %64, %65 : vector<16x256xf32>
    %67 = arith.truncf %66 : vector<16x256xf32> to vector<16x256xbf16>
    %c5_51 = arith.constant 5 : index
    %c0_52 = arith.constant 0 : index
    %c0_53 = arith.constant 0 : index
    %68 = vector.load %arg4[%c5_51, %c0_52, %c0_53] : memref<8x256x256xbf16, #tpu.memory_space<vmem>>, vector<1x256x256xbf16>
    %69 = vector.shape_cast %68 : vector<1x256x256xbf16> to vector<256x256xbf16>
    %c6 = arith.constant 6 : index
    %c0_54 = arith.constant 0 : index
    %c0_55 = arith.constant 0 : index
    %70 = vector.load %arg5[%c6, %c0_54, %c0_55] : memref<9x1x256xf32, #tpu.memory_space<vmem>>, vector<1x1x256xf32>
    %71 = vector.shape_cast %70 : vector<1x1x256xf32> to vector<1x256xf32>
    %cst_56 = arith.constant dense<0.000000e+00> : vector<16x256xf32>
    %72 = tpu.matmul %67, %69, %cst_56 {dimension_numbers = #tpu.dot_dimension_numbers<[1], [0], [0], [1], [0, 0, 1, 1], [], []>} : vector<16x256xbf16>, vector<256x256xbf16>, vector<16x256xf32> -> vector<16x256xf32>
    %73 = vector.broadcast %71 : vector<1x256xf32> to vector<16x256xf32>
    %74 = arith.addf %72, %73 : vector<16x256xf32>
    %cst_57 = arith.constant 0.000000e+00 : f32
    %75 = vector.broadcast %cst_57 : f32 to vector<16x256xf32>
    %76 = arith.maximumf %74, %75 : vector<16x256xf32>
    %77 = arith.truncf %76 : vector<16x256xf32> to vector<16x256xbf16>
    %c6_58 = arith.constant 6 : index
    %c0_59 = arith.constant 0 : index
    %c0_60 = arith.constant 0 : index
    %78 = vector.load %arg4[%c6_58, %c0_59, %c0_60] : memref<8x256x256xbf16, #tpu.memory_space<vmem>>, vector<1x256x256xbf16>
    %79 = vector.shape_cast %78 : vector<1x256x256xbf16> to vector<256x256xbf16>
    %c7 = arith.constant 7 : index
    %c0_61 = arith.constant 0 : index
    %c0_62 = arith.constant 0 : index
    %80 = vector.load %arg5[%c7, %c0_61, %c0_62] : memref<9x1x256xf32, #tpu.memory_space<vmem>>, vector<1x1x256xf32>
    %81 = vector.shape_cast %80 : vector<1x1x256xf32> to vector<1x256xf32>
    %cst_63 = arith.constant dense<0.000000e+00> : vector<16x256xf32>
    %82 = tpu.matmul %77, %79, %cst_63 {dimension_numbers = #tpu.dot_dimension_numbers<[1], [0], [0], [1], [0, 0, 1, 1], [], []>} : vector<16x256xbf16>, vector<256x256xbf16>, vector<16x256xf32> -> vector<16x256xf32>
    %83 = vector.broadcast %81 : vector<1x256xf32> to vector<16x256xf32>
    %84 = arith.addf %82, %83 : vector<16x256xf32>
    %cst_64 = arith.constant 0.000000e+00 : f32
    %85 = vector.broadcast %cst_64 : f32 to vector<16x256xf32>
    %86 = arith.maximumf %84, %85 : vector<16x256xf32>
    %87 = arith.truncf %86 : vector<16x256xf32> to vector<16x256xbf16>
    %c7_65 = arith.constant 7 : index
    %c0_66 = arith.constant 0 : index
    %c0_67 = arith.constant 0 : index
    %88 = vector.load %arg4[%c7_65, %c0_66, %c0_67] : memref<8x256x256xbf16, #tpu.memory_space<vmem>>, vector<1x256x256xbf16>
    %89 = vector.shape_cast %88 : vector<1x256x256xbf16> to vector<256x256xbf16>
    %c8 = arith.constant 8 : index
    %c0_68 = arith.constant 0 : index
    %c0_69 = arith.constant 0 : index
    %90 = vector.load %arg5[%c8, %c0_68, %c0_69] : memref<9x1x256xf32, #tpu.memory_space<vmem>>, vector<1x1x256xf32>
    %91 = vector.shape_cast %90 : vector<1x1x256xf32> to vector<1x256xf32>
    %cst_70 = arith.constant dense<0.000000e+00> : vector<16x256xf32>
    %92 = tpu.matmul %87, %89, %cst_70 {dimension_numbers = #tpu.dot_dimension_numbers<[1], [0], [0], [1], [0, 0, 1, 1], [], []>} : vector<16x256xbf16>, vector<256x256xbf16>, vector<16x256xf32> -> vector<16x256xf32>
    %93 = vector.broadcast %91 : vector<1x256xf32> to vector<16x256xf32>
    %94 = arith.addf %92, %93 : vector<16x256xf32>
    %95 = arith.truncf %94 : vector<16x256xf32> to vector<16x256xbf16>
    %c0_71 = arith.constant 0 : index
    %c0_72 = arith.constant 0 : index
    %96 = vector.load %arg6[%c0_71, %c0_72] : memref<256x128xbf16, #tpu.memory_space<vmem>>, vector<256x128xbf16>
    %c0_73 = arith.constant 0 : index
    %c0_74 = arith.constant 0 : index
    %97 = vector.load %arg7[%c0_73, %c0_74] : memref<1x128xf32, #tpu.memory_space<vmem>>, vector<1x128xf32>
    %cst_75 = arith.constant dense<0.000000e+00> : vector<16x128xf32>
    %98 = tpu.matmul %95, %96, %cst_75 {dimension_numbers = #tpu.dot_dimension_numbers<[1], [0], [0], [1], [0, 0, 1, 1], [], []>} : vector<16x256xbf16>, vector<256x128xbf16>, vector<16x128xf32> -> vector<16x128xf32>
    %99 = vector.broadcast %97 : vector<1x128xf32> to vector<16x128xf32>
    %100 = arith.addf %98, %99 : vector<16x128xf32>
    %cst_76 = arith.constant 0.000000e+00 : f32
    %101 = vector.broadcast %cst_76 : f32 to vector<16x128xf32>
    %102 = arith.maximumf %100, %101 : vector<16x128xf32>
    %c0_77 = arith.constant 0 : index
    %c0_78 = arith.constant 0 : index
    %103 = vector.load %arg8[%c0_77, %c0_78] : memref<1x128xf32, #tpu.memory_space<vmem>>, vector<1x128xf32>
    %104 = vector.broadcast %103 : vector<1x128xf32> to vector<16x128xf32>
    %105 = arith.mulf %102, %104 : vector<16x128xf32>
    %cst_79 = arith.constant dense<0.000000e+00> : vector<16xf32>
    %106 = vector.multi_reduction <add>, %105, %cst_79 [1] : vector<16x128xf32> to vector<16xf32>
    %107 = vector.shape_cast %106 : vector<16xf32> to vector<16x1xf32>
    %c0_80 = arith.constant 0 : index
    %c0_81 = arith.constant 0 : index
    %108 = vector.load %arg9[%c0_80, %c0_81] : memref<1x1xf32, #tpu.memory_space<vmem>>, vector<1x1xf32>
    %109 = vector.broadcast %108 : vector<1x1xf32> to vector<16x1xf32>
    %110 = arith.addf %107, %109 : vector<16x1xf32>
    %cst_82 = arith.constant 0.000000e+00 : f32
    %111 = vector.broadcast %cst_82 : f32 to vector<16x1xf32>
    %112 = arith.subf %111, %110 : vector<16x1xf32>
    %113 = math.exp %112 : vector<16x1xf32>
    %cst_83 = arith.constant 1.000000e+00 : f32
    %114 = vector.broadcast %cst_83 : f32 to vector<16x1xf32>
    %115 = arith.addf %114, %113 : vector<16x1xf32>
    %cst_84 = arith.constant 1.000000e+00 : f32
    %116 = vector.broadcast %cst_84 : f32 to vector<16x1xf32>
    %117 = arith.divf %116, %115 : vector<16x1xf32>
    %c0_85 = arith.constant 0 : index
    %c0_86 = arith.constant 0 : index
    %118 = vector.load %arg10[%c0_85, %c0_86] : memref<16x1xf32, #tpu.memory_space<vmem>>, vector<16x1xf32>
    tpu.vector_store %arg10[%c0_85, %c0_86], %117 {strides = array<i32>} : memref<16x1xf32, #tpu.memory_space<vmem>>, vector<16x1xf32>,
    return
  }
  func.func @transform_0(%arg0: i32) -> (i32, i32) {
    %c0_i32 = arith.constant 0 : i32
    %c0_i32_0 = arith.constant 0 : i32
    return %arg0, %c0_i32 : i32, i32
  }
  func.func @transform_1(%arg0: i32) -> (i32, i32) {
    %c0_i32 = arith.constant 0 : i32
    %c0_i32_0 = arith.constant 0 : i32
    %c0_i32_1 = arith.constant 0 : i32
    return %c0_i32, %c0_i32_0 : i32, i32
  }
  func.func @transform_2(%arg0: i32) -> (i32, i32) {
    %c0_i32 = arith.constant 0 : i32
    %c0_i32_0 = arith.constant 0 : i32
    %c0_i32_1 = arith.constant 0 : i32
    return %c0_i32, %c0_i32_0 : i32, i32
  }
  func.func @transform_3(%arg0: i32) -> (i32, i32, i32) {
    %c0_i32 = arith.constant 0 : i32
    %c0_i32_0 = arith.constant 0 : i32
    %c0_i32_1 = arith.constant 0 : i32
    %c0_i32_2 = arith.constant 0 : i32
    return %c0_i32, %c0_i32_0, %c0_i32_1 : i32, i32, i32
  }
  func.func @transform_4(%arg0: i32) -> (i32, i32, i32) {
    %c0_i32 = arith.constant 0 : i32
    %c0_i32_0 = arith.constant 0 : i32
    %c0_i32_1 = arith.constant 0 : i32
    %c0_i32_2 = arith.constant 0 : i32
    return %c0_i32, %c0_i32_0, %c0_i32_1 : i32, i32, i32
  }
  func.func @transform_5(%arg0: i32) -> (i32, i32) {
    %c0_i32 = arith.constant 0 : i32
    %c0_i32_0 = arith.constant 0 : i32
    %c0_i32_1 = arith.constant 0 : i32
    return %c0_i32, %c0_i32_0 : i32, i32
  }
  func.func @transform_6(%arg0: i32) -> (i32, i32) {
    %c0_i32 = arith.constant 0 : i32
    %c0_i32_0 = arith.constant 0 : i32
    %c0_i32_1 = arith.constant 0 : i32
    return %c0_i32, %c0_i32_0 : i32, i32
  }
  func.func @transform_7(%arg0: i32) -> (i32, i32) {
    %c0_i32 = arith.constant 0 : i32
    %c0_i32_0 = arith.constant 0 : i32
    %c0_i32_1 = arith.constant 0 : i32
    return %c0_i32, %c0_i32_0 : i32, i32
  }
  func.func @transform_8(%arg0: i32) -> (i32, i32) {
    %c0_i32 = arith.constant 0 : i32
    %c0_i32_0 = arith.constant 0 : i32
    %c0_i32_1 = arith.constant 0 : i32
    return %c0_i32, %c0_i32_0 : i32, i32
  }
  func.func @transform_9(%arg0: i32) -> (i32, i32) {
    %c0_i32 = arith.constant 0 : i32
    %c0_i32_0 = arith.constant 0 : i32
    return %arg0, %c0_i32 : i32, i32
  }
}

</mosaic_0001>

<bundles_post_ra>
// kernel: nerf_forward.1
= control target key start
LH: loop header
LB: loop body
LE: loop exit
PB: predicated region body
PF: predicated region fallthrough
CT: control target
= control target key end

     0   :  { %s3805_s0 = inlined_call_operand.hbm [shape: f32[16,82], index: 0, kind: input, shape index: {}]   ;;  %s3806_s1 = inlined_call_operand.hbm [shape: bf16[128,256], index: 1, kind: input, shape index: {}]   ;;  %s3807_s2 = inlined_call_operand.hbm [shape: bf16[128,256], index: 2, kind: input, shape index: {}]   ;;  %s3808_s3 = inlined_call_operand.hbm [shape: bf16[8,256,256], index: 3, kind: input, shape index: {}]   ;;  %s3809_s4 = inlined_call_operand.vmem [shape: f32[9,1,256], index: 4, kind: input, shape index: {}]   ;;  %s3810_s5 = inlined_call_operand.hbm [shape: bf16[256,128], index: 5, kind: input, shape index: {}]   ;;  %s3811_s6 = inlined_call_operand.vmem [shape: f32[1,128], index: 6, kind: input, shape index: {}]   ;;  %s3812_s7 = inlined_call_operand.vmem [shape: f32[1,128], index: 7, kind: input, shape index: {}]   ;;  %s3813_s8 = inlined_call_operand.<no memory space> [shape: f32[1,1], index: 8, kind: input, shape index: {}]   ;;  %s3814_s9 = inlined_call_operand.vmem [shape: f32[16,1], index: 9, kind: output, shape index: {}]  }
   0x1   :  { %v14_v0 = vstv %s3813_s8 }
   0x2   :  { %15 = vst [vmem:[#allocation3] sm:$0x1] %v14_v0 }
   0x3   :  { %16 = vsyncpa [#allocation5], 0 }
   0x4   :  { %17 = vsyncpa [#allocation7], 0 }
   0x5   :  { %18 = vsyncpa [#allocation10], 0  ;;  %s3592_s11 = smov [#allocation6]   ;;  %s3593_s13 = smov [#allocation9]  }
   0x6   :  { %s36_s12 = sshll.u32 %s3592_s11, 4  ;;  %s60_s14 = sshll.u32 %s3593_s13, 4  ;;  %s37_s12 = int_to_ptr.vmem [resolvable:$true] %s36_s12  ;;  %s3655_s14 = int_to_ptr.vmem [resolvable:$true] %s60_s14 }
   0x7   :  { %s3476_s17 = scalar_lea.hbm %s3806_s1, 2048 }
   0x8   :  { %p3477_p0 = scmp.ne.s32.totalorder %s3806_s1, %s3476_s17  ;;  %p3480_p1 = scmp.lt.u32.totalorder %s3476_s17, %s3806_s1 }
   0xa   :  { %p3482_p2 = pnand %p3480_p1, %p3477_p0 }
   0xc   :  { %3485 = shalt.err (!%p3482_p2)
}
   0xd   :  { %s3486_s21 = scalar_lea.vmem %s37_s12, 2048  ;;  %p3491_p4 = scmp.lt.s32.totalorder %s37_s12, %s37_s12 }
   0xe   :  { %p3487_p3 = scmp.ne.s32.totalorder %s37_s12, %s3486_s21  ;;  %p3492_p5 = scmp.lt.s32.totalorder %s3486_s21, %s3486_s21 }
  0x10   :  { %p3493_p6 = por %p3492_p5, %p3491_p4 }
  0x12   :  { %p3494_p7 = pnand %p3493_p6, %p3487_p3 }
  0x14   :  { %3497 = shalt.err (!%p3494_p7)
}
  0x15   :  { %s3594_s22 = smov 128   ;;  %s3595_s23 = smov 8  }
  0x16   :  { %42 = dma.hbm_to_vmem [thread:$0]  %s3806_s1, 2048, %s37_s12, [#allocation7], %s3594_s22, %s3594_s22, %s3595_s23  }
  0x17   :  { %s3498_s28 = scalar_lea.hbm %s3808_s3, 32768 }
  0x18   :  { %p3499_p8 = scmp.ne.s32.totalorder %s3808_s3, %s3498_s28  ;;  %p3502_p9 = scmp.lt.u32.totalorder %s3498_s28, %s3808_s3 }
  0x1a   :  { %p3504_p10 = pnand %p3502_p9, %p3499_p8 }
  0x1c   :  { %3507 = shalt.err (!%p3504_p10)
}
  0x1d   :  { %s3508_s13 = scalar_lea.vmem %s3655_s14, 32768  ;;  %p3513_p12 = scmp.lt.s32.totalorder %s3655_s14, %s3655_s14 }
  0x1e   :  { %p3509_p11 = scmp.ne.s32.totalorder %s3655_s14, %s3508_s13  ;;  %p3514_p13 = scmp.lt.s32.totalorder %s3508_s13, %s3508_s13 }
  0x20   :  { %p3515_p0 = por %p3514_p13, %p3513_p12 }
  0x22   :  { %p3516_p1 = pnand %p3515_p0, %p3509_p11 }
  0x24   :  { %3519 = shalt.err (!%p3516_p1)
}
  0x25   :  { %66 = dma.hbm_to_vmem [thread:$0]  %s3808_s3, 32768, %s3655_s14, [#allocation10], %s3594_s22, %s3594_s22, %s3595_s23  }
  0x26   :  { %s3596_s15 = smov [#allocation4]   ;;  %s3597_s17 = smov [#allocation8]  }
  0x27   :  { %s24_s16 = sshll.u32 %s3596_s15, 4  ;;  %s48_s18 = sshll.u32 %s3597_s17, 4  ;;  %s25_s16 = int_to_ptr.vmem [resolvable:$true] %s24_s16  ;;  %s3692_s18 = int_to_ptr.vmem [resolvable:$true] %s48_s18 }
  0x28   :  { %s3520_s20 = scalar_lea.hbm %s3805_s0, 256 }
  0x29   :  { %p3521_p2 = scmp.ne.s32.totalorder %s3805_s0, %s3520_s20  ;;  %p3524_p3 = scmp.lt.u32.totalorder %s3520_s20, %s3805_s0 }
  0x2b   :  { %p3526_p4 = pnand %p3524_p3, %p3521_p2 }
  0x2d   :  { %3529 = shalt.err (!%p3526_p4)
}
  0x2e   :  { %s3530_s3 = scalar_lea.vmem %s25_s16, 256  ;;  %p3535_p6 = scmp.lt.s32.totalorder %s25_s16, %s25_s16 }
  0x2f   :  { %p3531_p5 = scmp.ne.s32.totalorder %s25_s16, %s3530_s3  ;;  %p3536_p7 = scmp.lt.s32.totalorder %s3530_s3, %s3530_s3 }
  0x31   :  { %p3537_p8 = por %p3536_p7, %p3535_p6 }
  0x33   :  { %p3538_p9 = pnand %p3537_p8, %p3531_p5 }
  0x35   :  { %3541 = shalt.err (!%p3538_p9)
}
  0x36   :  { %30 = dma.hbm_to_vmem [thread:$0]  %s3805_s0, 256, %s25_s16, [#allocation5], %s3594_s22, %s3594_s22, %s3595_s23  }
  0x37   :  { %s3542_s30 = scalar_lea.hbm %s3807_s2, 2048 }
  0x38   :  { %p3543_p10 = scmp.ne.s32.totalorder %s3807_s2, %s3542_s30  ;;  %p3546_p11 = scmp.lt.u32.totalorder %s3542_s30, %s3807_s2 }
  0x3a   :  { %p3548_p12 = pnand %p3546_p11, %p3543_p10 }
  0x3c   :  { %3551 = shalt.err (!%p3548_p12)
}
  0x3d   :  { %s3552_s12 = scalar_lea.vmem %s3692_s18, 2048  ;;  %p3557_p0 = scmp.lt.s32.totalorder %s3692_s18, %s3692_s18 }
  0x3e   :  { %p3553_p13 = scmp.ne.s32.totalorder %s3692_s18, %s3552_s12  ;;  %p3558_p1 = scmp.lt.s32.totalorder %s3552_s12, %s3552_s12 }
  0x40   :  { %p3559_p2 = por %p3558_p1, %p3557_p0 }
  0x42   :  { %p3560_p3 = pnand %p3559_p2, %p3553_p13 }
  0x44   :  { %3563 = shalt.err (!%p3560_p3)
}
  0x45   :  { %54 = dma.hbm_to_vmem [thread:$0]  %s3807_s2, 2048, %s3692_s18, [#allocation7], %s3594_s22, %s3594_s22, %s3595_s23  }
  0x46   :  { %s3598_s16 = smov [#allocation11]   ;;  %s3564_s20 = scalar_lea.hbm %s3810_s5, 2048 }
  0x47   :  { %s74_s17 = sshll.u32 %s3598_s16, 4  ;;  %p3565_p4 = scmp.ne.s32.totalorder %s3810_s5, %s3564_s20  ;;  %s75_s17 = int_to_ptr.vmem [resolvable:$true] %s74_s17 }
  0x48   :  { %p3568_p5 = scmp.lt.u32.totalorder %s3564_s20, %s3810_s5 }
  0x4a   :  { %p3570_p6 = pnand %p3568_p5, %p3565_p4 }
  0x4c   :  { %3573 = shalt.err (!%p3570_p6)
}
  0x4d   :  { %s3574_s3 = scalar_lea.vmem %s75_s17, 2048  ;;  %p3579_p8 = scmp.lt.s32.totalorder %s75_s17, %s75_s17 }
  0x4e   :  { %p3575_p7 = scmp.ne.s32.totalorder %s75_s17, %s3574_s3  ;;  %p3580_p9 = scmp.lt.s32.totalorder %s3574_s3, %s3574_s3 }
  0x50   :  { %p3581_p10 = por %p3580_p9, %p3579_p8 }
  0x52   :  { %p3582_p11 = pnand %p3581_p10, %p3575_p7 }
  0x54   :  { %3585 = shalt.err (!%p3582_p11)
}
  0x55   :  { %s3599_s2 = smov 64   ;;  %s3600_s22 = smov 4  }
  0x56   :  { %80 = dma.hbm_to_vmem [thread:$0]  %s3810_s5, 2048, %s75_s17, [#allocation10], %s3599_s2, %s3599_s2, %s3600_s22  }
  0x57   :  { %3586 = dma.done.wait [#allocation5], 256  }
  0x58   :  { %3587 = vsyncadd [#allocation5], 4294967040 }
  0x59   :  { %3588 = dma.done.wait [#allocation7], 4096  }
  0x5a   :  { %3589 = vsyncadd [#allocation7], 4294963200 }
  0x5b   :  { %3590 = dma.done.wait [#allocation10], 34816  }
  0x5c   :  { %3591 = vsyncadd [#allocation10], 4294932480  ;;  %vm103_vm0 = vcmask 1048208   ;;  %v3601_v1 = vmov 0   ;;  %v3019_v2 = vld [vmem:[#allocation6 + $0x4] ss:$8 sps:$4 sm:$0xff]  }
  0x5d   :  { %104 = vst.msk [vmem:[#allocation2] sm:$0xff] %vm103_vm0, %v3601_v1  ;;  %251 = vmatprep.mubr.bf16.mxu0 %v3601_v1  ;;  %v3021_v3 = vld [vmem:[#allocation6] ss:$8 sps:$4 sm:$0xff]   ;;  %219 = vmatprep.subr.bf16.mxu0 %v3019_v2  ;;  %v3022_v4 = vld [vmem:[#allocation6 + $0x14] ss:$8 sps:$4 sm:$0xff]   ;;  %vm108_vm1 = vcmask 670720  }
  0x5e   :  { %220 = vmatpush1.bf16.msra.mxu0 %v3021_v3  ;;  %v3024_v5 = vld [vmem:[#allocation6 + $0x10] ss:$8 sps:$4 sm:$0xff]   ;;  %v3025_v6 = vld [vmem:[#allocation6 + $0x24] ss:$8 sps:$4 sm:$0xff]   ;;  %v3027_v7 = vld [vmem:[#allocation6 + $0x20] ss:$8 sps:$4 sm:$0xff]  }
  0x5f   :  { %221 = vmatprep.subr.bf16.mxu0 %v3022_v4  ;;  %v3028_v8 = vld [vmem:[#allocation6 + $0x34] ss:$8 sps:$4 sm:$0xff]   ;;  %v3030_v9 = vld [vmem:[#allocation6 + $0x30] ss:$8 sps:$4 sm:$0xff]   ;;  %v3031_v10 = vld [vmem:[#allocation6 + $0x44] ss:$8 sps:$4 sm:$0xff]  }
  0x60   :  { %v105_v11 = vld [vmem:[#allocation4] sm:$0xff]  ;;  %v106_v12 = vld [vmem:[#allocation4 + $0x8] sm:$0xff]  ;;  %v3043_v14 = vld [vmem:[#allocation9 + $0x4] ss:$8 sps:$4 sm:$0xff]   ;;  %vm2658_vm2 = vcmask 7168  }
  0x61   :  { %v107_v13 = vpack.c.bf16 %v106_v12, %v105_v11  ;;  %v3045_v15 = vld [vmem:[#allocation9] ss:$8 sps:$4 sm:$0xff]   ;;  %v3046_v16 = vld [vmem:[#allocation9 + $0x14] ss:$8 sps:$4 sm:$0xff]   ;;  %473 = vmatprep.subr.bf16.mxu1 %v3043_v14  ;;  %v3048_v18 = vld [vmem:[#allocation9 + $0x10] ss:$8 sps:$4 sm:$0xff]  }
  0x62   :  { %222 = vmatpush1.bf16.msra.mxu0 %v3024_v5  ;;  %v3033_v17 = vld [vmem:[#allocation6 + $0x40] ss:$8 sps:$4 sm:$0xff]   ;;  %474 = vmatpush1.bf16.msra.mxu1 %v3045_v15  ;;  %v3034_v19 = vld [vmem:[#allocation6 + $0x54] ss:$8 sps:$4 sm:$0xff]   ;;  %v3049_v20 = vld [vmem:[#allocation9 + $0x24] ss:$8 sps:$4 sm:$0xff]  }
  0x63   :  { %223 = vmatprep.subr.bf16.mxu0 %v3025_v6  ;;  %109 = vst.msk [vmem:[#allocation2] sm:$0xff] %vm108_vm1, %v107_v13  ;;  %475 = vmatprep.subr.bf16.mxu1 %v3046_v16  ;;  %v3036_v21 = vld [vmem:[#allocation6 + $0x50] ss:$8 sps:$4 sm:$0xff]   ;;  %v3051_v22 = vld [vmem:[#allocation9 + $0x20] ss:$8 sps:$4 sm:$0xff]  }
  0x64   :  { %v3037_v23 = vld [vmem:[#allocation6 + $0x64] ss:$8 sps:$4 sm:$0xff]   ;;  %v3052_v24 = vld [vmem:[#allocation9 + $0x34] ss:$8 sps:$4 sm:$0xff]   ;;  %v3039_v25 = vld [vmem:[#allocation6 + $0x60] ss:$8 sps:$4 sm:$0xff]  }
  0x65   :  { %v3054_v26 = vld [vmem:[#allocation9 + $0x30] ss:$8 sps:$4 sm:$0xff]   ;;  %v3040_v27 = vld [vmem:[#allocation6 + $0x74] ss:$8 sps:$4 sm:$0xff]   ;;  %v3055_v28 = vld [vmem:[#allocation9 + $0x44] ss:$8 sps:$4 sm:$0xff]  }
  0x66   :  { %224 = vmatpush1.bf16.msra.mxu0 %v3027_v7  ;;  %476 = vmatpush1.bf16.msra.mxu1 %v3048_v18  ;;  %v3042_v29 = vld [vmem:[#allocation6 + $0x70] ss:$8 sps:$4 sm:$0xff]   ;;  %v3057_v30 = vld [vmem:[#allocation9 + $0x40] ss:$8 sps:$4 sm:$0xff]   ;;  %v3058_v31 = vld [vmem:[#allocation9 + $0x54] ss:$8 sps:$4 sm:$0xff]  }
  0x67   :  { %225 = vmatprep.subr.bf16.mxu0 %v3028_v8  ;;  %477 = vmatprep.subr.bf16.mxu1 %v3049_v20  ;;  %v3060_v32 = vld [vmem:[#allocation9 + $0x50] ss:$8 sps:$4 sm:$0xff]   ;;  %v3061_v34 = vld [vmem:[#allocation9 + $0x64] ss:$8 sps:$4 sm:$0xff]   ;;  %v3063_v35 = vld [vmem:[#allocation9 + $0x60] ss:$8 sps:$4 sm:$0xff]  }
  0x68   :  { %v3064_v36 = vld [vmem:[#allocation9 + $0x74] ss:$8 sps:$4 sm:$0xff]   ;;  %v3066_v37 = vld [vmem:[#allocation9 + $0x70] ss:$8 sps:$4 sm:$0xff]   ;;  %v3067_v38 = vld [vmem:[#allocation9 + $0x84] ss:$8 sps:$4 sm:$0xff]  }
  0x69   :  { %v3069_v39 = vld [vmem:[#allocation9 + $0x80] ss:$8 sps:$4 sm:$0xff]   ;;  %v3070_v40 = vld [vmem:[#allocation9 + $0x94] ss:$8 sps:$4 sm:$0xff]   ;;  %v3072_v41 = vld [vmem:[#allocation9 + $0x90] ss:$8 sps:$4 sm:$0xff]  }
  0x6a   :  { %226 = vmatpush1.bf16.msra.mxu0 %v3030_v9  ;;  %478 = vmatpush1.bf16.msra.mxu1 %v3051_v22  ;;  %v110_v33 = vld [vmem:[#allocation2] sm:$0xff]  ;;  %v3076_v44 = vld [vmem:[#allocation9 + $0xb4] ss:$8 sps:$4 sm:$0xff]   ;;  %v3078_v45 = vld [vmem:[#allocation9 + $0xb0] ss:$8 sps:$4 sm:$0xff]  }
  0x6b   :  { %227 = vmatprep.subr.bf16.mxu0 %v3031_v10  ;;  %479 = vmatprep.subr.bf16.mxu1 %v3052_v24  ;;  %v3073_v42 = vld [vmem:[#allocation9 + $0xa4] ss:$8 sps:$4 sm:$0xff]   ;;  %v3075_v43 = vld [vmem:[#allocation9 + $0xa0] ss:$8 sps:$4 sm:$0xff]   ;;  %v3082_v48 = vld [vmem:[#allocation9 + $0xd4] ss:$8 sps:$4 sm:$0xff]  }
  0x6c   :  { %v3079_v46 = vld [vmem:[#allocation9 + $0xc4] ss:$8 sps:$4 sm:$0xff]   ;;  %v3081_v47 = vld [vmem:[#allocation9 + $0xc0] ss:$8 sps:$4 sm:$0xff]   ;;  %v3084_v49 = vld [vmem:[#allocation9 + $0xd0] ss:$8 sps:$4 sm:$0xff]  }
  0x6d   :  { %v3085_v50 = vld [vmem:[#allocation9 + $0xe4] ss:$8 sps:$4 sm:$0xff]   ;;  %v3087_v51 = vld [vmem:[#allocation9 + $0xe0] ss:$8 sps:$4 sm:$0xff]   ;;  %v3088_v52 = vld [vmem:[#allocation9 + $0xf4] ss:$8 sps:$4 sm:$0xff]  }
  0x6e   :  { %228 = vmatpush1.bf16.msra.mxu0 %v3033_v17  ;;  %480 = vmatpush1.bf16.msra.mxu1 %v3054_v26  ;;  %v3090_v53 = vld [vmem:[#allocation9 + $0xf0] ss:$8 sps:$4 sm:$0xff]   ;;  %v3091_v54 = vld [vmem:[#allocation9 + $0x100] ss:$8 sps:$4 sm:$0xff]   ;;  %v3093_v55 = vld [vmem:[#allocation9 + $0x104] ss:$8 sps:$4 sm:$0xff]  }
  0x6f   :  { %229 = vmatprep.subr.bf16.mxu0 %v3034_v19  ;;  %481 = vmatprep.subr.bf16.mxu1 %v3055_v28  ;;  %v3096_v56 = vld [vmem:[#allocation9 + $0x114] ss:$8 sps:$4 sm:$0xff]   ;;  %v3094_v57 = vld [vmem:[#allocation9 + $0x110] ss:$8 sps:$4 sm:$0xff]   ;;  %v3099_v58 = vld [vmem:[#allocation9 + $0x124] ss:$8 sps:$4 sm:$0xff]   ;;  %v129_v19 = vlaneseq }
  0x70   :  { %v3097_v59 = vld [vmem:[#allocation9 + $0x120] ss:$8 sps:$4 sm:$0xff]   ;;  %v3102_v60 = vld [vmem:[#allocation9 + $0x134] ss:$8 sps:$4 sm:$0xff]   ;;  %v3100_v61 = vld [vmem:[#allocation9 + $0x130] ss:$8 sps:$4 sm:$0xff]  }
  0x71   :  { %v3105_v62 = vld [vmem:[#allocation9 + $0x144] ss:$8 sps:$4 sm:$0xff]   ;;  %v3103_v63 = vld [vmem:[#allocation9 + $0x140] ss:$8 sps:$4 sm:$0xff]   ;;  %v3108_v0 = vld [vmem:[#allocation9 + $0x154] ss:$8 sps:$4 sm:$0xff]  }
  0x72   :  { %230 = vmatpush1.bf16.msra.mxu0 %v3036_v21  ;;  %482 = vmatpush1.bf16.msra.mxu1 %v3057_v30  ;;  %v3106_v2 = vld [vmem:[#allocation9 + $0x150] ss:$8 sps:$4 sm:$0xff]   ;;  %v3111_v3 = vld [vmem:[#allocation9 + $0x164] ss:$8 sps:$4 sm:$0xff]   ;;  %v3109_v4 = vld [vmem:[#allocation9 + $0x160] ss:$8 sps:$4 sm:$0xff]  }
  0x73   :  { %231 = vmatprep.subr.bf16.mxu0 %v3037_v23  ;;  %483 = vmatprep.subr.bf16.mxu1 %v3058_v31  ;;  %v3114_v5 = vld [vmem:[#allocation9 + $0x174] ss:$8 sps:$4 sm:$0xff]   ;;  %v3112_v6 = vld [vmem:[#allocation9 + $0x170] ss:$8 sps:$4 sm:$0xff]   ;;  %v3117_v7 = vld [vmem:[#allocation9 + $0x184] ss:$8 sps:$4 sm:$0xff]  }
  0x74   :  { %v3115_v8 = vld [vmem:[#allocation9 + $0x180] ss:$8 sps:$4 sm:$0xff]   ;;  %v3120_v9 = vld [vmem:[#allocation9 + $0x194] ss:$8 sps:$4 sm:$0xff]   ;;  %v3118_v10 = vld [vmem:[#allocation9 + $0x190] ss:$8 sps:$4 sm:$0xff]  }
  0x75   :  { %v3123_v11 = vld [vmem:[#allocation9 + $0x1a4] ss:$8 sps:$4 sm:$0xff]   ;;  %v3121_v12 = vld [vmem:[#allocation9 + $0x1a0] ss:$8 sps:$4 sm:$0xff]   ;;  %v3126_v13 = vld [vmem:[#allocation9 + $0x1b4] ss:$8 sps:$4 sm:$0xff]  }
  0x76   :  { %232 = vmatpush1.bf16.msra.mxu0 %v3039_v25  ;;  %484 = vmatpush1.bf16.msra.mxu1 %v3060_v32  ;;  %v3124_v14 = vld [vmem:[#allocation9 + $0x1b0] ss:$8 sps:$4 sm:$0xff]   ;;  %v3129_v15 = vld [vmem:[#allocation9 + $0x1c4] ss:$8 sps:$4 sm:$0xff]   ;;  %v3127_v16 = vld [vmem:[#allocation9 + $0x1c0] ss:$8 sps:$4 sm:$0xff]  }
  0x77   :  { %233 = vmatprep.subr.bf16.mxu0 %v3040_v27  ;;  %485 = vmatprep.subr.bf16.mxu1 %v3061_v34  ;;  %v3132_v17 = vld [vmem:[#allocation9 + $0x1d4] ss:$8 sps:$4 sm:$0xff]   ;;  %v3130_v18 = vld [vmem:[#allocation9 + $0x1d0] ss:$8 sps:$4 sm:$0xff]   ;;  %v130_v20 = vshrl.u32 %v129_v19, 7 }
  0x78   :  { %v127_v22 = vld [vmem:[%s3809_s4] sm:$0x3] }
  0x79   :  { %v3743_v21 = vsub.s32 0, %v130_v20  ;;  %v3748_v23 = vsub.s32 1, %v130_v20 }
  0x7a   :  { %234 = vmatpush1.bf16.msra.mxu0 %v3042_v29  ;;  %486 = vmatpush1.bf16.msra.mxu1 %v3063_v35 }
  0x7b   :  { %487 = vmatprep.subr.bf16.mxu1 %v3064_v36  ;;  %728 = vmatprep.subr.bf16.mxu0 %v3093_v55  ;;  %v132_v24 = vrot.slane %v127_v22, %v3743_v21  ;;  %v136_v25 = vrot.slane %v127_v22, %v3748_v23  ;;  %v3154_v55 = vld [vmem:[#allocation9 + $0x250] ss:$8 sps:$4 sm:$0xff]  }
  0x7d   :  { %252 = vmatmul.mubr.bf16.vlgmr.msra.gmra.mrb[0].mxu0 %v110_v33 }
  0x7e   :  { %488 = vmatpush1.bf16.msra.mxu1 %v3066_v37  ;;  %729 = vmatpush1.bf16.msra.mxu0 %v3091_v54  ;;  %v3156_v54 = vld [vmem:[#allocation9 + $0x254] ss:$8 sps:$4 sm:$0xff]  }
  0x7f   :  { %489 = vmatprep.subr.bf16.mxu1 %v3067_v38  ;;  %730 = vmatprep.subr.bf16.mxu0 %v3096_v56  ;;  %v3159_v56 = vld [vmem:[#allocation9 + $0x264] ss:$8 sps:$4 sm:$0xff]  }
  0x82   :  { %490 = vmatpush1.bf16.msra.mxu1 %v3069_v39  ;;  %731 = vmatpush1.bf16.msra.mxu0 %v3094_v57  ;;  %v3157_v57 = vld [vmem:[#allocation9 + $0x260] ss:$8 sps:$4 sm:$0xff]  }
  0x83   :  { %491 = vmatprep.subr.bf16.mxu1 %v3070_v40  ;;  %732 = vmatprep.subr.bf16.mxu0 %v3099_v58  ;;  %v3135_v40 = vld [vmem:[#allocation9 + $0x1e4] ss:$8 sps:$4 sm:$0xff]   ;;  %v3162_v58 = vld [vmem:[#allocation9 + $0x274] ss:$8 sps:$4 sm:$0xff]  }
  0x86   :  { %492 = vmatpush1.bf16.msra.mxu1 %v3072_v41  ;;  %733 = vmatpush1.bf16.msra.mxu0 %v3097_v59  ;;  %v3133_v41 = vld [vmem:[#allocation9 + $0x1e0] ss:$8 sps:$4 sm:$0xff]   ;;  %v3160_v59 = vld [vmem:[#allocation9 + $0x270] ss:$8 sps:$4 sm:$0xff]  }
  0x87   :  { %493 = vmatprep.subr.bf16.mxu1 %v3073_v42  ;;  %734 = vmatprep.subr.bf16.mxu0 %v3102_v60  ;;  %v3138_v42 = vld [vmem:[#allocation9 + $0x1f4] ss:$8 sps:$4 sm:$0xff]   ;;  %v3165_v60 = vld [vmem:[#allocation9 + $0x284] ss:$8 sps:$4 sm:$0xff]  }
  0x8a   :  { %494 = vmatpush1.bf16.msra.mxu1 %v3075_v43  ;;  %735 = vmatpush1.bf16.msra.mxu0 %v3100_v61  ;;  %v3136_v43 = vld [vmem:[#allocation9 + $0x1f0] ss:$8 sps:$4 sm:$0xff]   ;;  %v3163_v61 = vld [vmem:[#allocation9 + $0x280] ss:$8 sps:$4 sm:$0xff]  }
  0x8b   :  { %495 = vmatprep.subr.bf16.mxu1 %v3076_v44  ;;  %736 = vmatprep.subr.bf16.mxu0 %v3105_v62  ;;  %v3139_v44 = vld [vmem:[#allocation9 + $0x200] ss:$8 sps:$4 sm:$0xff]   ;;  %v3168_v62 = vld [vmem:[#allocation9 + $0x294] ss:$8 sps:$4 sm:$0xff]  }
  0x8e   :  { %496 = vmatpush1.bf16.msra.mxu1 %v3078_v45  ;;  %737 = vmatpush1.bf16.msra.mxu0 %v3103_v63  ;;  %v3141_v45 = vld [vmem:[#allocation9 + $0x204] ss:$8 sps:$4 sm:$0xff]   ;;  %v3166_v63 = vld [vmem:[#allocation9 + $0x290] ss:$8 sps:$4 sm:$0xff]  }
  0x8f   :  { %497 = vmatprep.subr.bf16.mxu1 %v3079_v46  ;;  %738 = vmatprep.subr.bf16.mxu0 %v3108_v0  ;;  %v3144_v46 = vld [vmem:[#allocation9 + $0x214] ss:$8 sps:$4 sm:$0xff]   ;;  %v3171_v0 = vld [vmem:[#allocation9 + $0x2a4] ss:$8 sps:$4 sm:$0xff]  }
  0x92   :  { %498 = vmatpush1.bf16.msra.mxu1 %v3081_v47  ;;  %739 = vmatpush1.bf16.msra.mxu0 %v3106_v2  ;;  %v3142_v47 = vld [vmem:[#allocation9 + $0x210] ss:$8 sps:$4 sm:$0xff]   ;;  %v3169_v2 = vld [vmem:[#allocation9 + $0x2a0] ss:$8 sps:$4 sm:$0xff]  }
  0x93   :  { %499 = vmatprep.subr.bf16.mxu1 %v3082_v48  ;;  %740 = vmatprep.subr.bf16.mxu0 %v3111_v3  ;;  %v3147_v48 = vld [vmem:[#allocation9 + $0x224] ss:$8 sps:$4 sm:$0xff]   ;;  %v3174_v3 = vld [vmem:[#allocation9 + $0x2b4] ss:$8 sps:$4 sm:$0xff]  }
  0x96   :  { %500 = vmatpush1.bf16.msra.mxu1 %v3084_v49  ;;  %741 = vmatpush1.bf16.msra.mxu0 %v3109_v4  ;;  %v3145_v49 = vld [vmem:[#allocation9 + $0x220] ss:$8 sps:$4 sm:$0xff]   ;;  %v3172_v4 = vld [vmem:[#allocation9 + $0x2b0] ss:$8 sps:$4 sm:$0xff]  }
  0x97   :  { %501 = vmatprep.subr.bf16.mxu1 %v3085_v50  ;;  %742 = vmatprep.subr.bf16.mxu0 %v3114_v5  ;;  %v3150_v50 = vld [vmem:[#allocation9 + $0x234] ss:$8 sps:$4 sm:$0xff]   ;;  %v3177_v5 = vld [vmem:[#allocation9 + $0x2c4] ss:$8 sps:$4 sm:$0xff]  }
  0x9a   :  { %502 = vmatpush1.bf16.msra.mxu1 %v3087_v51  ;;  %743 = vmatpush1.bf16.msra.mxu0 %v3112_v6  ;;  %v3148_v51 = vld [vmem:[#allocation9 + $0x230] ss:$8 sps:$4 sm:$0xff]   ;;  %v3175_v6 = vld [vmem:[#allocation9 + $0x2c0] ss:$8 sps:$4 sm:$0xff]  }
  0x9b   :  { %503 = vmatprep.subr.bf16.mxu1 %v3088_v52  ;;  %744 = vmatprep.subr.bf16.mxu0 %v3117_v7  ;;  %v3153_v52 = vld [vmem:[#allocation9 + $0x244] ss:$8 sps:$4 sm:$0xff]   ;;  %v3180_v7 = vld [vmem:[#allocation9 + $0x2d4] ss:$8 sps:$4 sm:$0xff]  }
  0x9e   :  { %504 = vmatpush1.bf16.msra.mxu1 %v3090_v53  ;;  %745 = vmatpush1.bf16.msra.mxu0 %v3115_v8  ;;  %v3151_v53 = vld [vmem:[#allocation9 + $0x240] ss:$8 sps:$4 sm:$0xff]   ;;  %v3178_v8 = vld [vmem:[#allocation9 + $0x2d0] ss:$8 sps:$4 sm:$0xff]  }
  0x9f   :  { %746 = vmatprep.subr.bf16.mxu0 %v3120_v9  ;;  %983 = vmatprep.subr.bf16.mxu1 %v3141_v45  ;;  %v2684_v9 = vld [vmem:[%s3809_s4 + $0x2] sm:$0x3] }
  0xa0   :  { %v3205_v45 = vld [vmem:[#allocation9 + $0x360] ss:$8 sps:$4 sm:$0xff]  }
  0xa2   :  { %747 = vmatpush1.bf16.msra.mxu0 %v3118_v10  ;;  %v306_v10 = vrot.slane %v2684_v9, %v3743_v21 }
  0xa3   :  { %748 = vmatprep.subr.bf16.mxu0 %v3123_v11  ;;  %v310_v11 = vrot.slane %v2684_v9, %v3748_v23 }
  0xa6   :  { %749 = vmatpush1.bf16.msra.mxu0 %v3121_v12 }
  0xa7   :  { %750 = vmatprep.subr.bf16.mxu0 %v3126_v13 }
  0xaa   :  { %751 = vmatpush1.bf16.msra.mxu0 %v3124_v14 }
  0xab   :  { %752 = vmatprep.subr.bf16.mxu0 %v3129_v15 }
  0xae   :  { %753 = vmatpush1.bf16.msra.mxu0 %v3127_v16 }
  0xaf   :  { %754 = vmatprep.subr.bf16.mxu0 %v3132_v17 }
  0xb2   :  { %755 = vmatpush1.bf16.msra.mxu0 %v3130_v18 }
  0xb3   :  { %756 = vmatprep.subr.bf16.mxu0 %v3135_v40  ;;  %v3201_v40 = vld [vmem:[#allocation9 + $0x344] ss:$8 sps:$4 sm:$0xff]  }
  0xb6   :  { %757 = vmatpush1.bf16.msra.mxu0 %v3133_v41  ;;  %v3199_v41 = vld [vmem:[#allocation9 + $0x340] ss:$8 sps:$4 sm:$0xff]  }
  0xb7   :  { %758 = vmatprep.subr.bf16.mxu0 %v3138_v42  ;;  %v3204_v42 = vld [vmem:[#allocation9 + $0x354] ss:$8 sps:$4 sm:$0xff]  }
  0xba   :  { %759 = vmatpush1.bf16.msra.mxu0 %v3136_v43  ;;  %v3202_v43 = vld [vmem:[#allocation9 + $0x350] ss:$8 sps:$4 sm:$0xff]  }
 0x150   :  { %v253_v26 = vpop.f32.mrb[0].mxu0 }
 0x151   :  { %v254_v27 = vadd.f32 %v253_v26, %v132_v24  ;;  %v255_v28 = vpop.f32.mrb[1].mxu0 }
 0x152   :  { %v256_v29 = vadd.f32 %v255_v28, %v136_v25  ;;  %v257_v30 = vpop.f32.mrb[2].mxu0  ;;  %v3183_v28 = vld [vmem:[#allocation9 + $0x2e4] ss:$8 sps:$4 sm:$0xff]  }
 0x153   :  { %v258_v31 = vadd.f32 %v257_v30, %v132_v24  ;;  %v259_v32 = vpop.f32.mrb[3].mxu0  ;;  %v262_v34 = vmax.f32 %v254_v27, 0.0  ;;  %v3186_v30 = vld [vmem:[#allocation9 + $0x2f4] ss:$8 sps:$4 sm:$0xff]  }
 0x154   :  { %v260_v33 = vadd.f32 %v259_v32, %v136_v25  ;;  %v263_v36 = vmax.f32 %v256_v29, 0.0  ;;  %v3181_v29 = vld [vmem:[#allocation9 + $0x2e0] ss:$8 sps:$4 sm:$0xff]  }
 0x155   :  { %v264_v35 = vmax.f32 %v258_v31, 0.0  ;;  %v3184_v31 = vld [vmem:[#allocation9 + $0x2f0] ss:$8 sps:$4 sm:$0xff]   ;;  %v3187_v32 = vld [vmem:[#allocation9 + $0x300] ss:$8 sps:$4 sm:$0xff]  }
 0x156   :  { %v265_v37 = vmax.f32 %v260_v33, 0.0  ;;  %v3189_v33 = vld [vmem:[#allocation9 + $0x304] ss:$8 sps:$4 sm:$0xff]  }
 0x157   :  { %v266_v38 = vpack.c.bf16 %v264_v35, %v262_v34  ;;  %v3192_v34 = vld [vmem:[#allocation9 + $0x314] ss:$8 sps:$4 sm:$0xff]   ;;  %1241 = vmatprep.subr.bf16.mxu0 %v3189_v33  ;;  %v3190_v35 = vld [vmem:[#allocation9 + $0x310] ss:$8 sps:$4 sm:$0xff]   ;;  %v3279_v33 = vld [vmem:[#allocation9 + $0x464] ss:$8 sps:$4 sm:$0xff]  }
 0x158   :  { %v267_v39 = vpack.c.bf16 %v265_v37, %v263_v36  ;;  %v3195_v36 = vld [vmem:[#allocation9 + $0x324] ss:$8 sps:$4 sm:$0xff]   ;;  %v3193_v37 = vld [vmem:[#allocation9 + $0x320] ss:$8 sps:$4 sm:$0xff]  }
 0x15a   :  { %505 = vmatprep.mubr.bf16.mxu1 %v267_v39  ;;  %v3196_v39 = vld [vmem:[#allocation9 + $0x330] ss:$8 sps:$4 sm:$0xff]  }
 0x15b   :  { %506 = vmatmul.mubr.bf16.vlgmr.msra.gmra.mrb[0].mxu1 %v266_v38  ;;  %v3198_v38 = vld [vmem:[#allocation9 + $0x334] ss:$8 sps:$4 sm:$0xff]  }
 0x15c   :  { %984 = vmatpush1.bf16.msra.mxu1 %v3139_v44  ;;  %v3207_v44 = vld [vmem:[#allocation9 + $0x364] ss:$8 sps:$4 sm:$0xff]  }
 0x15d   :  { %985 = vmatprep.subr.bf16.mxu1 %v3144_v46  ;;  %v3210_v46 = vld [vmem:[#allocation9 + $0x374] ss:$8 sps:$4 sm:$0xff]  }
 0x160   :  { %986 = vmatpush1.bf16.msra.mxu1 %v3142_v47  ;;  %v3208_v47 = vld [vmem:[#allocation9 + $0x370] ss:$8 sps:$4 sm:$0xff]  }
 0x161   :  { %987 = vmatprep.subr.bf16.mxu1 %v3147_v48  ;;  %v3213_v48 = vld [vmem:[#allocation9 + $0x384] ss:$8 sps:$4 sm:$0xff]  }
 0x164   :  { %988 = vmatpush1.bf16.msra.mxu1 %v3145_v49  ;;  %v3211_v49 = vld [vmem:[#allocation9 + $0x380] ss:$8 sps:$4 sm:$0xff]  }
 0x165   :  { %989 = vmatprep.subr.bf16.mxu1 %v3150_v50  ;;  %v3216_v50 = vld [vmem:[#allocation9 + $0x394] ss:$8 sps:$4 sm:$0xff]  }
 0x168   :  { %990 = vmatpush1.bf16.msra.mxu1 %v3148_v51  ;;  %v3214_v51 = vld [vmem:[#allocation9 + $0x390] ss:$8 sps:$4 sm:$0xff]  }
 0x169   :  { %991 = vmatprep.subr.bf16.mxu1 %v3153_v52  ;;  %v3219_v52 = vld [vmem:[#allocation9 + $0x3a4] ss:$8 sps:$4 sm:$0xff]  }
 0x16c   :  { %992 = vmatpush1.bf16.msra.mxu1 %v3151_v53  ;;  %v3217_v53 = vld [vmem:[#allocation9 + $0x3a0] ss:$8 sps:$4 sm:$0xff]  }
 0x16d   :  { %993 = vmatprep.subr.bf16.mxu1 %v3156_v54  ;;  %v3222_v54 = vld [vmem:[#allocation9 + $0x3b4] ss:$8 sps:$4 sm:$0xff]  }
 0x170   :  { %994 = vmatpush1.bf16.msra.mxu1 %v3154_v55  ;;  %v3220_v55 = vld [vmem:[#allocation9 + $0x3b0] ss:$8 sps:$4 sm:$0xff]  }
 0x171   :  { %995 = vmatprep.subr.bf16.mxu1 %v3159_v56  ;;  %v3225_v56 = vld [vmem:[#allocation9 + $0x3c4] ss:$8 sps:$4 sm:$0xff]  }
 0x174   :  { %996 = vmatpush1.bf16.msra.mxu1 %v3157_v57  ;;  %v3223_v57 = vld [vmem:[#allocation9 + $0x3c0] ss:$8 sps:$4 sm:$0xff]  }
 0x175   :  { %997 = vmatprep.subr.bf16.mxu1 %v3162_v58  ;;  %v3228_v58 = vld [vmem:[#allocation9 + $0x3d4] ss:$8 sps:$4 sm:$0xff]  }
 0x178   :  { %998 = vmatpush1.bf16.msra.mxu1 %v3160_v59  ;;  %v3226_v59 = vld [vmem:[#allocation9 + $0x3d0] ss:$8 sps:$4 sm:$0xff]  }
 0x179   :  { %999 = vmatprep.subr.bf16.mxu1 %v3165_v60  ;;  %v2717_v60 = vld [vmem:[%s3809_s4 + $0x4] sm:$0x3] }
 0x17c   :  { %1000 = vmatpush1.bf16.msra.mxu1 %v3163_v61  ;;  %v561_v61 = vrot.slane %v2717_v60, %v3743_v21 }
 0x17d   :  { %1001 = vmatprep.subr.bf16.mxu1 %v3168_v62  ;;  %v565_v62 = vrot.slane %v2717_v60, %v3748_v23 }
 0x180   :  { %1002 = vmatpush1.bf16.msra.mxu1 %v3166_v63 }
 0x181   :  { %1003 = vmatprep.subr.bf16.mxu1 %v3171_v0 }
 0x184   :  { %1004 = vmatpush1.bf16.msra.mxu1 %v3169_v2 }
 0x185   :  { %1005 = vmatprep.subr.bf16.mxu1 %v3174_v3 }
 0x188   :  { %1006 = vmatpush1.bf16.msra.mxu1 %v3172_v4 }
 0x189   :  { %1007 = vmatprep.subr.bf16.mxu1 %v3177_v5 }
 0x18c   :  { %1008 = vmatpush1.bf16.msra.mxu1 %v3175_v6 }
 0x18d   :  { %1009 = vmatprep.subr.bf16.mxu1 %v3180_v7 }
 0x190   :  { %1010 = vmatpush1.bf16.msra.mxu1 %v3178_v8 }
 0x191   :  { %1011 = vmatprep.subr.bf16.mxu1 %v3183_v28  ;;  %v3268_v28 = vld [vmem:[#allocation9 + $0x430] ss:$8 sps:$4 sm:$0xff]  }
 0x194   :  { %1012 = vmatpush1.bf16.msra.mxu1 %v3181_v29  ;;  %v3273_v29 = vld [vmem:[#allocation9 + $0x444] ss:$8 sps:$4 sm:$0xff]  }
 0x195   :  { %1013 = vmatprep.subr.bf16.mxu1 %v3186_v30  ;;  %v3271_v30 = vld [vmem:[#allocation9 + $0x440] ss:$8 sps:$4 sm:$0xff]  }
 0x198   :  { %1014 = vmatpush1.bf16.msra.mxu1 %v3184_v31  ;;  %v3276_v31 = vld [vmem:[#allocation9 + $0x454] ss:$8 sps:$4 sm:$0xff]  }
 0x22e   :  { %v507_v12 = vpop.f32.mrb[0].mxu1 }
 0x22f   :  { %v508_v13 = vadd.f32 %v507_v12, %v306_v10  ;;  %v509_v14 = vpop.f32.mrb[1].mxu1 }
 0x230   :  { %v510_v15 = vadd.f32 %v509_v14, %v310_v11  ;;  %v511_v16 = vpop.f32.mrb[2].mxu1  ;;  %v3231_v14 = vld [vmem:[#allocation9 + $0x3e4] ss:$8 sps:$4 sm:$0xff]  }
 0x231   :  { %v512_v17 = vadd.f32 %v511_v16, %v306_v10  ;;  %v513_v18 = vpop.f32.mrb[3].mxu1  ;;  %v516_v20 = vmax.f32 %v508_v13, 0.0  ;;  %v3234_v16 = vld [vmem:[#allocation9 + $0x3f4] ss:$8 sps:$4 sm:$0xff]  }
 0x232   :  { %v514_v19 = vadd.f32 %v513_v18, %v310_v11  ;;  %v517_v24 = vmax.f32 %v510_v15, 0.0  ;;  %v3229_v15 = vld [vmem:[#allocation9 + $0x3e0] ss:$8 sps:$4 sm:$0xff]   ;;  %v3237_v18 = vld [vmem:[#allocation8 + $0x4] ss:$8 sps:$4 sm:$0xff]  }
 0x233   :  { %v518_v22 = vmax.f32 %v512_v17, 0.0  ;;  %v3232_v17 = vld [vmem:[#allocation9 + $0x3f0] ss:$8 sps:$4 sm:$0xff]  }
 0x234   :  { %v519_v25 = vmax.f32 %v514_v19, 0.0  ;;  %v3259_v19 = vld [vmem:[#allocation9 + $0x400] ss:$8 sps:$4 sm:$0xff]  }
 0x235   :  { %v520_v26 = vpack.c.bf16 %v518_v22, %v516_v20  ;;  %v3261_v20 = vld [vmem:[#allocation9 + $0x404] ss:$8 sps:$4 sm:$0xff]   ;;  %v3264_v22 = vld [vmem:[#allocation9 + $0x414] ss:$8 sps:$4 sm:$0xff]  }
 0x236   :  { %v521_v27 = vpack.c.bf16 %v519_v25, %v517_v24  ;;  %1636 = vmatprep.subr.bf16.mxu1 %v3261_v20  ;;  %v3262_v24 = vld [vmem:[#allocation9 + $0x410] ss:$8 sps:$4 sm:$0xff]   ;;  %v3267_v25 = vld [vmem:[#allocation9 + $0x424] ss:$8 sps:$4 sm:$0xff]   ;;  %v3306_v20 = vld [vmem:[#allocation9 + $0x4f4] ss:$8 sps:$4 sm:$0xff]  }
 0x238   :  { %760 = vmatprep.mubr.bf16.mxu0 %v521_v27  ;;  %v3270_v27 = vld [vmem:[#allocation9 + $0x434] ss:$8 sps:$4 sm:$0xff]  }
 0x239   :  { %761 = vmatmul.mubr.bf16.vlgmr.msra.gmra.mrb[4].mxu0 %v520_v26  ;;  %v3265_v26 = vld [vmem:[#allocation9 + $0x420] ss:$8 sps:$4 sm:$0xff]  }
 0x23a   :  { %1242 = vmatpush1.bf16.msra.mxu0 %v3187_v32  ;;  %v3274_v32 = vld [vmem:[#allocation9 + $0x450] ss:$8 sps:$4 sm:$0xff]  }
 0x23b   :  { %1243 = vmatprep.subr.bf16.mxu0 %v3192_v34  ;;  %v3277_v34 = vld [vmem:[#allocation9 + $0x460] ss:$8 sps:$4 sm:$0xff]  }
 0x23e   :  { %1244 = vmatpush1.bf16.msra.mxu0 %v3190_v35  ;;  %v3282_v35 = vld [vmem:[#allocation9 + $0x474] ss:$8 sps:$4 sm:$0xff]  }
 0x23f   :  { %1245 = vmatprep.subr.bf16.mxu0 %v3195_v36  ;;  %v3280_v36 = vld [vmem:[#allocation9 + $0x470] ss:$8 sps:$4 sm:$0xff]  }
 0x242   :  { %1246 = vmatpush1.bf16.msra.mxu0 %v3193_v37  ;;  %v3285_v37 = vld [vmem:[#allocation9 + $0x484] ss:$8 sps:$4 sm:$0xff]  }
 0x243   :  { %1247 = vmatprep.subr.bf16.mxu0 %v3198_v38  ;;  %v3283_v38 = vld [vmem:[#allocation9 + $0x480] ss:$8 sps:$4 sm:$0xff]  }
 0x246   :  { %1248 = vmatpush1.bf16.msra.mxu0 %v3196_v39  ;;  %v3288_v39 = vld [vmem:[#allocation9 + $0x494] ss:$8 sps:$4 sm:$0xff]  }
 0x247   :  { %1249 = vmatprep.subr.bf16.mxu0 %v3201_v40  ;;  %v3286_v40 = vld [vmem:[#allocation9 + $0x490] ss:$8 sps:$4 sm:$0xff]  }
 0x24a   :  { %1250 = vmatpush1.bf16.msra.mxu0 %v3199_v41  ;;  %v3291_v41 = vld [vmem:[#allocation9 + $0x4a4] ss:$8 sps:$4 sm:$0xff]  }
 0x24b   :  { %1251 = vmatprep.subr.bf16.mxu0 %v3204_v42  ;;  %v3289_v42 = vld [vmem:[#allocation9 + $0x4a0] ss:$8 sps:$4 sm:$0xff]  }
 0x24e   :  { %1252 = vmatpush1.bf16.msra.mxu0 %v3202_v43  ;;  %v3294_v43 = vld [vmem:[#allocation9 + $0x4b4] ss:$8 sps:$4 sm:$0xff]  }
 0x24f   :  { %1253 = vmatprep.subr.bf16.mxu0 %v3207_v44  ;;  %v3292_v44 = vld [vmem:[#allocation9 + $0x4b0] ss:$8 sps:$4 sm:$0xff]  }
 0x252   :  { %1254 = vmatpush1.bf16.msra.mxu0 %v3205_v45  ;;  %v3297_v45 = vld [vmem:[#allocation9 + $0x4c4] ss:$8 sps:$4 sm:$0xff]  }
 0x253   :  { %1255 = vmatprep.subr.bf16.mxu0 %v3210_v46  ;;  %v3295_v46 = vld [vmem:[#allocation9 + $0x4c0] ss:$8 sps:$4 sm:$0xff]  }
 0x256   :  { %1256 = vmatpush1.bf16.msra.mxu0 %v3208_v47  ;;  %v3300_v47 = vld [vmem:[#allocation9 + $0x4d4] ss:$8 sps:$4 sm:$0xff]  }
 0x257   :  { %1257 = vmatprep.subr.bf16.mxu0 %v3213_v48  ;;  %v3298_v48 = vld [vmem:[#allocation9 + $0x4d0] ss:$8 sps:$4 sm:$0xff]  }
 0x25a   :  { %1258 = vmatpush1.bf16.msra.mxu0 %v3211_v49  ;;  %v2750_v49 = vld [vmem:[%s3809_s4 + $0x6] sm:$0x3] }
 0x25b   :  { %1259 = vmatprep.subr.bf16.mxu0 %v3216_v50  ;;  %v816_v50 = vrot.slane %v2750_v49, %v3743_v21 }
 0x25e   :  { %1260 = vmatpush1.bf16.msra.mxu0 %v3214_v51  ;;  %v820_v51 = vrot.slane %v2750_v49, %v3748_v23  ;;  %v3343_v49 = vld [vmem:[#allocation9 + $0x5c0] ss:$8 sps:$4 sm:$0xff]  }
 0x25f   :  { %1261 = vmatprep.subr.bf16.mxu0 %v3219_v52 }
 0x262   :  { %1262 = vmatpush1.bf16.msra.mxu0 %v3217_v53 }
 0x263   :  { %1263 = vmatprep.subr.bf16.mxu0 %v3222_v54 }
 0x266   :  { %1264 = vmatpush1.bf16.msra.mxu0 %v3220_v55 }
 0x267   :  { %1265 = vmatprep.subr.bf16.mxu0 %v3225_v56 }
 0x26a   :  { %1266 = vmatpush1.bf16.msra.mxu0 %v3223_v57 }
 0x26b   :  { %1267 = vmatprep.subr.bf16.mxu0 %v3228_v58 }
 0x26e   :  { %1268 = vmatpush1.bf16.msra.mxu0 %v3226_v59 }
 0x26f   :  { %1269 = vmatprep.subr.bf16.mxu0 %v3231_v14  ;;  %v3255_v14 = vld [vmem:[#allocation8 + $0x64] ss:$8 sps:$4 sm:$0xff]  }
 0x272   :  { %1270 = vmatpush1.bf16.msra.mxu0 %v3229_v15  ;;  %v3258_v15 = vld [vmem:[#allocation8 + $0x74] ss:$8 sps:$4 sm:$0xff]  }
 0x273   :  { %1271 = vmatprep.subr.bf16.mxu0 %v3234_v16  ;;  %v3256_v16 = vld [vmem:[#allocation8 + $0x70] ss:$8 sps:$4 sm:$0xff]  }
 0x276   :  { %1272 = vmatpush1.bf16.msra.mxu0 %v3232_v17  ;;  %v3475_v17 = vld [vmem:[#allocation2] sm:$0xff] }
 0x277   :  { %1364 = vmatprep.subr.bf16.mxu0 %v3237_v18  ;;  %v3303_v18 = vld [vmem:[#allocation9 + $0x4e4] ss:$8 sps:$4 sm:$0xff]  }
 0x30c   :  { %v762_v63 = vpop.f32.mrb[4].mxu0 }
 0x30d   :  { %v763_v0 = vadd.f32 %v762_v63, %v561_v61  ;;  %v764_v2 = vpop.f32.mrb[5].mxu0 }
 0x30e   :  { %v765_v3 = vadd.f32 %v764_v2, %v565_v62  ;;  %v766_v4 = vpop.f32.mrb[6].mxu0 }
 0x30f   :  { %v767_v5 = vadd.f32 %v766_v4, %v561_v61  ;;  %v768_v6 = vpop.f32.mrb[7].mxu0  ;;  %v771_v8 = vmax.f32 %v763_v0, 0.0  ;;  %v3240_v4 = vld [vmem:[#allocation8 + $0x14] ss:$8 sps:$4 sm:$0xff]  }
 0x310   :  { %v769_v7 = vadd.f32 %v768_v6, %v565_v62  ;;  %v772_v10 = vmax.f32 %v765_v3, 0.0  ;;  %v3235_v3 = vld [vmem:[#allocation8] ss:$8 sps:$4 sm:$0xff]   ;;  %v3243_v6 = vld [vmem:[#allocation8 + $0x24] ss:$8 sps:$4 sm:$0xff]  }
 0x311   :  { %v773_v9 = vmax.f32 %v767_v5, 0.0  ;;  %v3238_v5 = vld [vmem:[#allocation8 + $0x10] ss:$8 sps:$4 sm:$0xff]  }
 0x312   :  { %v774_v11 = vmax.f32 %v769_v7, 0.0  ;;  %v3241_v7 = vld [vmem:[#allocation8 + $0x20] ss:$8 sps:$4 sm:$0xff]  }
 0x313   :  { %v775_v12 = vpack.c.bf16 %v773_v9, %v771_v8  ;;  %v3246_v8 = vld [vmem:[#allocation8 + $0x34] ss:$8 sps:$4 sm:$0xff]   ;;  %v3244_v9 = vld [vmem:[#allocation8 + $0x30] ss:$8 sps:$4 sm:$0xff]  }
 0x314   :  { %v776_v13 = vpack.c.bf16 %v774_v11, %v772_v10  ;;  %v3249_v10 = vld [vmem:[#allocation8 + $0x44] ss:$8 sps:$4 sm:$0xff]   ;;  %v3247_v11 = vld [vmem:[#allocation8 + $0x40] ss:$8 sps:$4 sm:$0xff]  }
 0x316   :  { %1015 = vmatprep.mubr.bf16.mxu1 %v776_v13  ;;  %v3250_v13 = vld [vmem:[#allocation8 + $0x50] ss:$8 sps:$4 sm:$0xff]  }
 0x317   :  { %1016 = vmatmul.mubr.bf16.vlgmr.msra.gmra.mrb[4].mxu1 %v775_v12  ;;  %v3252_v12 = vld [vmem:[#allocation8 + $0x54] ss:$8 sps:$4 sm:$0xff]  }
 0x318   :  { %1637 = vmatpush1.bf16.msra.mxu1 %v3259_v19  ;;  %v3301_v19 = vld [vmem:[#allocation9 + $0x4e0] ss:$8 sps:$4 sm:$0xff]  }
 0x319   :  { %1638 = vmatprep.subr.bf16.mxu1 %v3264_v22  ;;  %v3304_v22 = vld [vmem:[#allocation9 + $0x4f0] ss:$8 sps:$4 sm:$0xff]  }
 0x31c   :  { %1639 = vmatpush1.bf16.msra.mxu1 %v3262_v24  ;;  %v3307_v24 = vld [vmem:[#allocation9 + $0x500] ss:$8 sps:$4 sm:$0xff]  }
 0x31d   :  { %1640 = vmatprep.subr.bf16.mxu1 %v3267_v25  ;;  %v3309_v25 = vld [vmem:[#allocation9 + $0x504] ss:$8 sps:$4 sm:$0xff]  }
 0x320   :  { %1641 = vmatpush1.bf16.msra.mxu1 %v3265_v26  ;;  %v3312_v26 = vld [vmem:[#allocation9 + $0x514] ss:$8 sps:$4 sm:$0xff]  }
 0x321   :  { %1642 = vmatprep.subr.bf16.mxu1 %v3270_v27  ;;  %v3310_v27 = vld [vmem:[#allocation9 + $0x510] ss:$8 sps:$4 sm:$0xff]  }
 0x324   :  { %1643 = vmatpush1.bf16.msra.mxu1 %v3268_v28  ;;  %v3315_v28 = vld [vmem:[#allocation9 + $0x524] ss:$8 sps:$4 sm:$0xff]  }
 0x325   :  { %1644 = vmatprep.subr.bf16.mxu1 %v3273_v29  ;;  %v3313_v29 = vld [vmem:[#allocation9 + $0x520] ss:$8 sps:$4 sm:$0xff]  }
 0x328   :  { %1645 = vmatpush1.bf16.msra.mxu1 %v3271_v30  ;;  %v3318_v30 = vld [vmem:[#allocation9 + $0x534] ss:$8 sps:$4 sm:$0xff]  }
 0x329   :  { %1646 = vmatprep.subr.bf16.mxu1 %v3276_v31  ;;  %v3316_v31 = vld [vmem:[#allocation9 + $0x530] ss:$8 sps:$4 sm:$0xff]  }
 0x32c   :  { %1647 = vmatpush1.bf16.msra.mxu1 %v3274_v32  ;;  %v3321_v32 = vld [vmem:[#allocation9 + $0x544] ss:$8 sps:$4 sm:$0xff]  }
 0x32d   :  { %1648 = vmatprep.subr.bf16.mxu1 %v3279_v33  ;;  %v3319_v33 = vld [vmem:[#allocation9 + $0x540] ss:$8 sps:$4 sm:$0xff]  }
 0x330   :  { %1649 = vmatpush1.bf16.msra.mxu1 %v3277_v34  ;;  %v3324_v34 = vld [vmem:[#allocation9 + $0x554] ss:$8 sps:$4 sm:$0xff]  }
 0x331   :  { %1650 = vmatprep.subr.bf16.mxu1 %v3282_v35  ;;  %v3322_v35 = vld [vmem:[#allocation9 + $0x550] ss:$8 sps:$4 sm:$0xff]  }
 0x334   :  { %1651 = vmatpush1.bf16.msra.mxu1 %v3280_v36  ;;  %v3327_v36 = vld [vmem:[#allocation9 + $0x564] ss:$8 sps:$4 sm:$0xff]  }
 0x335   :  { %1652 = vmatprep.subr.bf16.mxu1 %v3285_v37  ;;  %v3325_v37 = vld [vmem:[#allocation9 + $0x560] ss:$8 sps:$4 sm:$0xff]  }
 0x338   :  { %1653 = vmatpush1.bf16.msra.mxu1 %v3283_v38  ;;  %v3330_v38 = vld [vmem:[#allocation9 + $0x574] ss:$8 sps:$4 sm:$0xff]  }
 0x339   :  { %1654 = vmatprep.subr.bf16.mxu1 %v3288_v39  ;;  %v3328_v39 = vld [vmem:[#allocation9 + $0x570] ss:$8 sps:$4 sm:$0xff]  }
 0x33c   :  { %1655 = vmatpush1.bf16.msra.mxu1 %v3286_v40  ;;  %v3333_v40 = vld [vmem:[#allocation9 + $0x584] ss:$8 sps:$4 sm:$0xff]  }
 0x33d   :  { %1656 = vmatprep.subr.bf16.mxu1 %v3291_v41  ;;  %v3331_v41 = vld [vmem:[#allocation9 + $0x580] ss:$8 sps:$4 sm:$0xff]  }
 0x340   :  { %1657 = vmatpush1.bf16.msra.mxu1 %v3289_v42  ;;  %v3336_v42 = vld [vmem:[#allocation9 + $0x594] ss:$8 sps:$4 sm:$0xff]  }
 0x341   :  { %1658 = vmatprep.subr.bf16.mxu1 %v3294_v43  ;;  %v3334_v43 = vld [vmem:[#allocation9 + $0x590] ss:$8 sps:$4 sm:$0xff]  }
 0x344   :  { %1659 = vmatpush1.bf16.msra.mxu1 %v3292_v44  ;;  %v3339_v44 = vld [vmem:[#allocation9 + $0x5a4] ss:$8 sps:$4 sm:$0xff]  }
 0x345   :  { %1660 = vmatprep.subr.bf16.mxu1 %v3297_v45  ;;  %v3337_v45 = vld [vmem:[#allocation9 + $0x5a0] ss:$8 sps:$4 sm:$0xff]  }
 0x348   :  { %1661 = vmatpush1.bf16.msra.mxu1 %v3295_v46  ;;  %v3342_v46 = vld [vmem:[#allocation9 + $0x5b4] ss:$8 sps:$4 sm:$0xff]  }
 0x349   :  { %1662 = vmatprep.subr.bf16.mxu1 %v3300_v47  ;;  %v3340_v47 = vld [vmem:[#allocation9 + $0x5b0] ss:$8 sps:$4 sm:$0xff]  }
 0x34c   :  { %1663 = vmatpush1.bf16.msra.mxu1 %v3298_v48  ;;  %v3345_v48 = vld [vmem:[#allocation9 + $0x5c4] ss:$8 sps:$4 sm:$0xff]  }
 0x34d   :  { %1664 = vmatprep.subr.bf16.mxu1 %v3303_v18  ;;  %v3367_v18 = vld [vmem:[#allocation9 + $0x640] ss:$8 sps:$4 sm:$0xff]  }
 0x350   :  { %1665 = vmatpush1.bf16.msra.mxu1 %v3301_v19  ;;  %v3372_v19 = vld [vmem:[#allocation9 + $0x654] ss:$8 sps:$4 sm:$0xff]  }
 0x351   :  { %1666 = vmatprep.subr.bf16.mxu1 %v3306_v20  ;;  %v3370_v20 = vld [vmem:[#allocation9 + $0x650] ss:$8 sps:$4 sm:$0xff]  }
 0x354   :  { %1667 = vmatpush1.bf16.msra.mxu1 %v3304_v22  ;;  %v3375_v22 = vld [vmem:[#allocation9 + $0x664] ss:$8 sps:$4 sm:$0xff]  }
 0x3ea   :  { %v1017_v52 = vpop.f32.mrb[4].mxu1 }
 0x3eb   :  { %v1018_v53 = vadd.f32 %v1017_v52, %v816_v50  ;;  %v1019_v54 = vpop.f32.mrb[5].mxu1  ;;  %v2831_v52 = vld [vmem:[%s3809_s4 + $0x8] sm:$0x3] }
 0x3ec   :  { %v1020_v55 = vadd.f32 %v1019_v54, %v820_v51  ;;  %v1021_v56 = vpop.f32.mrb[6].mxu1  ;;  %v1417_v54 = vrot.slane %v2831_v52, %v3748_v23 }
 0x3ed   :  { %v1022_v57 = vadd.f32 %v1021_v56, %v816_v50  ;;  %v1023_v58 = vpop.f32.mrb[7].mxu1  ;;  %v1026_v60 = vmax.f32 %v1018_v53, 0.0  ;;  %v3348_v50 = vld [vmem:[#allocation9 + $0x5d4] ss:$8 sps:$4 sm:$0xff]   ;;  %v1413_v53 = vrot.slane %v2831_v52, %v3743_v21 }
 0x3ee   :  { %v1024_v59 = vadd.f32 %v1023_v58, %v820_v51  ;;  %v1027_v62 = vmax.f32 %v1020_v55, 0.0  ;;  %v3346_v51 = vld [vmem:[#allocation9 + $0x5d0] ss:$8 sps:$4 sm:$0xff]  }
 0x3ef   :  { %v1028_v61 = vmax.f32 %v1022_v57, 0.0 }
 0x3f0   :  { %v1029_v63 = vmax.f32 %v1024_v59, 0.0 }
 0x3f1   :  { %v1030_v0 = vpack.c.bf16 %v1028_v61, %v1026_v60 }
 0x3f2   :  { %v1031_v2 = vpack.c.bf16 %v1029_v63, %v1027_v62 }
 0x3f4   :  { %1273 = vmatprep.mubr.bf16.mxu0 %v1031_v2 }
 0x3f5   :  { %1274 = vmatmul.mubr.bf16.vlgmr.msra.gmra.mrb[8].mxu0 %v1030_v0 }
 0x3f6   :  { %1365 = vmatpush1.bf16.msra.mxu0 %v3235_v3  ;;  %1396 = vmatprep.mubr.bf16.mxu0 %v3601_v1  ;;  %v3253_v1 = vld [vmem:[#allocation8 + $0x60] ss:$8 sps:$4 sm:$0xff]  }
 0x3f7   :  { %1366 = vmatprep.subr.bf16.mxu0 %v3240_v4 }
 0x3fa   :  { %1367 = vmatpush1.bf16.msra.mxu0 %v3238_v5 }
 0x3fb   :  { %1368 = vmatprep.subr.bf16.mxu0 %v3243_v6  ;;  %v3351_v6 = vld [vmem:[#allocation9 + $0x5e4] ss:$8 sps:$4 sm:$0xff]  }
 0x3fe   :  { %1369 = vmatpush1.bf16.msra.mxu0 %v3241_v7  ;;  %v3349_v7 = vld [vmem:[#allocation9 + $0x5e0] ss:$8 sps:$4 sm:$0xff]  }
 0x3ff   :  { %1370 = vmatprep.subr.bf16.mxu0 %v3246_v8  ;;  %v3354_v8 = vld [vmem:[#allocation9 + $0x5f4] ss:$8 sps:$4 sm:$0xff]  }
 0x402   :  { %1371 = vmatpush1.bf16.msra.mxu0 %v3244_v9  ;;  %v3352_v9 = vld [vmem:[#allocation9 + $0x5f0] ss:$8 sps:$4 sm:$0xff]  }
 0x403   :  { %1372 = vmatprep.subr.bf16.mxu0 %v3249_v10  ;;  %v3355_v10 = vld [vmem:[#allocation9 + $0x600] ss:$8 sps:$4 sm:$0xff]  }
 0x406   :  { %1373 = vmatpush1.bf16.msra.mxu0 %v3247_v11  ;;  %v3357_v11 = vld [vmem:[#allocation9 + $0x604] ss:$8 sps:$4 sm:$0xff]  }
 0x407   :  { %1374 = vmatprep.subr.bf16.mxu0 %v3252_v12  ;;  %v3360_v12 = vld [vmem:[#allocation9 + $0x614] ss:$8 sps:$4 sm:$0xff]   ;;  %2146 = vmatprep.subr.bf16.mxu1 %v3357_v11 }
 0x408   :  { %v3426_v11 = vld [vmem:[#allocation9 + $0x774] ss:$8 sps:$4 sm:$0xff]  }
 0x40a   :  { %1375 = vmatpush1.bf16.msra.mxu0 %v3250_v13  ;;  %v3358_v13 = vld [vmem:[#allocation9 + $0x610] ss:$8 sps:$4 sm:$0xff]  }
 0x40b   :  { %1376 = vmatprep.subr.bf16.mxu0 %v3255_v14  ;;  %v3363_v14 = vld [vmem:[#allocation9 + $0x624] ss:$8 sps:$4 sm:$0xff]  }
 0x40e   :  { %1377 = vmatpush1.bf16.msra.mxu0 %v3253_v1  ;;  %v3361_v1 = vld [vmem:[#allocation9 + $0x620] ss:$8 sps:$4 sm:$0xff]  }
 0x40f   :  { %1378 = vmatprep.subr.bf16.mxu0 %v3258_v15  ;;  %v3366_v15 = vld [vmem:[#allocation9 + $0x634] ss:$8 sps:$4 sm:$0xff]  }
 0x412   :  { %1379 = vmatpush1.bf16.msra.mxu0 %v3256_v16  ;;  %v3364_v16 = vld [vmem:[#allocation9 + $0x630] ss:$8 sps:$4 sm:$0xff]  }
 0x413   :  { %1891 = vmatprep.subr.bf16.mxu0 %v3309_v25  ;;  %v3378_v25 = vld [vmem:[#allocation9 + $0x674] ss:$8 sps:$4 sm:$0xff]  }
 0x415   :  { %1397 = vmatmul.mubr.bf16.vlgmr.msra.gmra.mrb[8].mxu0 %v3475_v17  ;;  %v3369_v17 = vld [vmem:[#allocation9 + $0x644] ss:$8 sps:$4 sm:$0xff]  }
 0x416   :  { %1892 = vmatpush1.bf16.msra.mxu0 %v3307_v24  ;;  %v3373_v24 = vld [vmem:[#allocation9 + $0x660] ss:$8 sps:$4 sm:$0xff]  }
 0x417   :  { %1893 = vmatprep.subr.bf16.mxu0 %v3312_v26  ;;  %v3376_v26 = vld [vmem:[#allocation9 + $0x670] ss:$8 sps:$4 sm:$0xff]  }
 0x41a   :  { %1894 = vmatpush1.bf16.msra.mxu0 %v3310_v27  ;;  %v3381_v27 = vld [vmem:[#allocation9 + $0x684] ss:$8 sps:$4 sm:$0xff]  }
 0x41b   :  { %1895 = vmatprep.subr.bf16.mxu0 %v3315_v28  ;;  %v3379_v28 = vld [vmem:[#allocation9 + $0x680] ss:$8 sps:$4 sm:$0xff]  }
 0x41e   :  { %1896 = vmatpush1.bf16.msra.mxu0 %v3313_v29  ;;  %v3384_v29 = vld [vmem:[#allocation9 + $0x694] ss:$8 sps:$4 sm:$0xff]  }
 0x41f   :  { %1897 = vmatprep.subr.bf16.mxu0 %v3318_v30  ;;  %v3382_v30 = vld [vmem:[#allocation9 + $0x690] ss:$8 sps:$4 sm:$0xff]  }
 0x422   :  { %1898 = vmatpush1.bf16.msra.mxu0 %v3316_v31  ;;  %v3387_v31 = vld [vmem:[#allocation9 + $0x6a4] ss:$8 sps:$4 sm:$0xff]  }
 0x423   :  { %1899 = vmatprep.subr.bf16.mxu0 %v3321_v32  ;;  %v3385_v32 = vld [vmem:[#allocation9 + $0x6a0] ss:$8 sps:$4 sm:$0xff]  }
 0x426   :  { %1900 = vmatpush1.bf16.msra.mxu0 %v3319_v33  ;;  %v3390_v33 = vld [vmem:[#allocation9 + $0x6b4] ss:$8 sps:$4 sm:$0xff]  }
 0x427   :  { %1901 = vmatprep.subr.bf16.mxu0 %v3324_v34  ;;  %v3388_v34 = vld [vmem:[#allocation9 + $0x6b0] ss:$8 sps:$4 sm:$0xff]  }
 0x42a   :  { %1902 = vmatpush1.bf16.msra.mxu0 %v3322_v35  ;;  %v3393_v35 = vld [vmem:[#allocation9 + $0x6c4] ss:$8 sps:$4 sm:$0xff]  }
 0x42b   :  { %1903 = vmatprep.subr.bf16.mxu0 %v3327_v36  ;;  %v3391_v36 = vld [vmem:[#allocation9 + $0x6c0] ss:$8 sps:$4 sm:$0xff]  }
 0x42e   :  { %1904 = vmatpush1.bf16.msra.mxu0 %v3325_v37  ;;  %v3396_v37 = vld [vmem:[#allocation9 + $0x6d4] ss:$8 sps:$4 sm:$0xff]  }
 0x42f   :  { %1905 = vmatprep.subr.bf16.mxu0 %v3330_v38  ;;  %v3394_v38 = vld [vmem:[#allocation9 + $0x6d0] ss:$8 sps:$4 sm:$0xff]  }
 0x432   :  { %1906 = vmatpush1.bf16.msra.mxu0 %v3328_v39  ;;  %v2832_v39 = vld [vmem:[%s3809_s4 + $0xa] sm:$0x3] }
 0x433   :  { %1907 = vmatprep.subr.bf16.mxu0 %v3333_v40  ;;  %v1469_v40 = vrot.slane %v2832_v39, %v3743_v21 }
 0x436   :  { %1908 = vmatpush1.bf16.msra.mxu0 %v3331_v41  ;;  %v1473_v41 = vrot.slane %v2832_v39, %v3748_v23 }
 0x437   :  { %1909 = vmatprep.subr.bf16.mxu0 %v3336_v42 }
 0x43a   :  { %1910 = vmatpush1.bf16.msra.mxu0 %v3334_v43 }
 0x43b   :  { %1911 = vmatprep.subr.bf16.mxu0 %v3339_v44 }
 0x43e   :  { %1912 = vmatpush1.bf16.msra.mxu0 %v3337_v45 }
 0x43f   :  { %1913 = vmatprep.subr.bf16.mxu0 %v3342_v46 }
 0x442   :  { %1914 = vmatpush1.bf16.msra.mxu0 %v3340_v47 }
 0x443   :  { %1915 = vmatprep.subr.bf16.mxu0 %v3345_v48 }
 0x446   :  { %1916 = vmatpush1.bf16.msra.mxu0 %v3343_v49 }
 0x447   :  { %1917 = vmatprep.subr.bf16.mxu0 %v3348_v50 }
 0x44a   :  { %1918 = vmatpush1.bf16.msra.mxu0 %v3346_v51 }
 0x44b   :  { %1919 = vmatprep.subr.bf16.mxu0 %v3351_v6  ;;  %v3415_v6 = vld [vmem:[#allocation9 + $0x740] ss:$8 sps:$4 sm:$0xff]  }
 0x44e   :  { %1920 = vmatpush1.bf16.msra.mxu0 %v3349_v7  ;;  %v3420_v7 = vld [vmem:[#allocation9 + $0x754] ss:$8 sps:$4 sm:$0xff]  }
 0x44f   :  { %1921 = vmatprep.subr.bf16.mxu0 %v3354_v8  ;;  %v3418_v8 = vld [vmem:[#allocation9 + $0x750] ss:$8 sps:$4 sm:$0xff]  }
 0x452   :  { %1922 = vmatpush1.bf16.msra.mxu0 %v3352_v9  ;;  %v3423_v9 = vld [vmem:[#allocation9 + $0x764] ss:$8 sps:$4 sm:$0xff]  }
 0x4e8   :  { %v1398_v55 = vpop.f32.mrb[8].mxu0 }
 0x4e9   :  { %v1420_v56 = vadd.f32 %v1413_v53, %v1398_v55  ;;  %v1400_v57 = vpop.f32.mrb[9].mxu0 }
 0x4ea   :  { %v1421_v58 = vadd.f32 %v1417_v54, %v1400_v57  ;;  %v1402_v59 = vpop.f32.mrb[10].mxu0  ;;  %v3397_v57 = vld [vmem:[#allocation9 + $0x6e0] ss:$8 sps:$4 sm:$0xff]  }
 0x4eb   :  { %v1422_v60 = vadd.f32 %v1413_v53, %v1402_v59  ;;  %v1404_v61 = vpop.f32.mrb[11].mxu0  ;;  %v1424_v63 = vmax.f32 %v1420_v56, 0.0  ;;  %v3399_v56 = vld [vmem:[#allocation9 + $0x6e4] ss:$8 sps:$4 sm:$0xff]   ;;  %v3400_v59 = vld [vmem:[#allocation9 + $0x6f0] ss:$8 sps:$4 sm:$0xff]  }
 0x4ec   :  { %v1423_v62 = vadd.f32 %v1417_v54, %v1404_v61  ;;  %v1425_v2 = vmax.f32 %v1421_v58, 0.0  ;;  %v3402_v58 = vld [vmem:[#allocation9 + $0x6f4] ss:$8 sps:$4 sm:$0xff]   ;;  %v3405_v61 = vld [vmem:[#allocation9 + $0x704] ss:$8 sps:$4 sm:$0xff]  }
 0x4ed   :  { %v1426_v0 = vmax.f32 %v1422_v60, 0.0  ;;  %v3403_v60 = vld [vmem:[#allocation9 + $0x700] ss:$8 sps:$4 sm:$0xff]   ;;  %2401 = vmatprep.subr.bf16.mxu0 %v3405_v61 }
 0x4ee   :  { %v1427_v3 = vmax.f32 %v1423_v62, 0.0  ;;  %v3408_v62 = vld [vmem:[#allocation9 + $0x714] ss:$8 sps:$4 sm:$0xff]  }
 0x4ef   :  { %v1428_v4 = vpack.c.bf16 %v1426_v0, %v1424_v63  ;;  %v3406_v63 = vld [vmem:[#allocation9 + $0x710] ss:$8 sps:$4 sm:$0xff]   ;;  %v3411_v0 = vld [vmem:[#allocation9 + $0x724] ss:$8 sps:$4 sm:$0xff]  }
 0x4f0   :  { %v1429_v5 = vpack.c.bf16 %v1427_v3, %v1425_v2  ;;  %v3409_v2 = vld [vmem:[#allocation9 + $0x720] ss:$8 sps:$4 sm:$0xff]   ;;  %v3414_v3 = vld [vmem:[#allocation9 + $0x734] ss:$8 sps:$4 sm:$0xff]  }
 0x4f2   :  { %1668 = vmatprep.mubr.bf16.mxu1 %v1429_v5  ;;  %v3417_v5 = vld [vmem:[#allocation9 + $0x744] ss:$8 sps:$4 sm:$0xff]  }
 0x4f3   :  { %1669 = vmatmul.mubr.bf16.vlgmr.msra.gmra.mrb[8].mxu1 %v1428_v4  ;;  %v3412_v4 = vld [vmem:[#allocation9 + $0x730] ss:$8 sps:$4 sm:$0xff]  }
 0x4f4   :  { %2147 = vmatpush1.bf16.msra.mxu1 %v3355_v10  ;;  %v3421_v10 = vld [vmem:[#allocation9 + $0x760] ss:$8 sps:$4 sm:$0xff]  }
 0x4f5   :  { %2148 = vmatprep.subr.bf16.mxu1 %v3360_v12  ;;  %v3424_v12 = vld [vmem:[#allocation9 + $0x770] ss:$8 sps:$4 sm:$0xff]  }
 0x4f8   :  { %2149 = vmatpush1.bf16.msra.mxu1 %v3358_v13  ;;  %v3429_v13 = vld [vmem:[#allocation9 + $0x784] ss:$8 sps:$4 sm:$0xff]  }
 0x4f9   :  { %2150 = vmatprep.subr.bf16.mxu1 %v3363_v14  ;;  %v3427_v14 = vld [vmem:[#allocation9 + $0x780] ss:$8 sps:$4 sm:$0xff]  }
 0x4fc   :  { %2151 = vmatpush1.bf16.msra.mxu1 %v3361_v1  ;;  %v3432_v1 = vld [vmem:[#allocation9 + $0x794] ss:$8 sps:$4 sm:$0xff]  }
 0x4fd   :  { %2152 = vmatprep.subr.bf16.mxu1 %v3366_v15  ;;  %v3430_v15 = vld [vmem:[#allocation9 + $0x790] ss:$8 sps:$4 sm:$0xff]  }
 0x500   :  { %2153 = vmatpush1.bf16.msra.mxu1 %v3364_v16  ;;  %v3435_v16 = vld [vmem:[#allocation9 + $0x7a4] ss:$8 sps:$4 sm:$0xff]  }
 0x501   :  { %2154 = vmatprep.subr.bf16.mxu1 %v3369_v17  ;;  %v3433_v17 = vld [vmem:[#allocation9 + $0x7a0] ss:$8 sps:$4 sm:$0xff]  }
 0x504   :  { %2155 = vmatpush1.bf16.msra.mxu1 %v3367_v18  ;;  %v3438_v18 = vld [vmem:[#allocation9 + $0x7b4] ss:$8 sps:$4 sm:$0xff]  }
 0x505   :  { %2156 = vmatprep.subr.bf16.mxu1 %v3372_v19  ;;  %v3436_v19 = vld [vmem:[#allocation9 + $0x7b0] ss:$8 sps:$4 sm:$0xff]  }
 0x508   :  { %2157 = vmatpush1.bf16.msra.mxu1 %v3370_v20  ;;  %v3441_v20 = vld [vmem:[#allocation9 + $0x7c4] ss:$8 sps:$4 sm:$0xff]  }
 0x509   :  { %2158 = vmatprep.subr.bf16.mxu1 %v3375_v22  ;;  %v3439_v22 = vld [vmem:[#allocation9 + $0x7c0] ss:$8 sps:$4 sm:$0xff]  }
 0x50c   :  { %2159 = vmatpush1.bf16.msra.mxu1 %v3373_v24  ;;  %v3444_v24 = vld [vmem:[#allocation9 + $0x7d4] ss:$8 sps:$4 sm:$0xff]  }
 0x50d   :  { %2160 = vmatprep.subr.bf16.mxu1 %v3378_v25  ;;  %v3442_v25 = vld [vmem:[#allocation9 + $0x7d0] ss:$8 sps:$4 sm:$0xff]  }
 0x510   :  { %2161 = vmatpush1.bf16.msra.mxu1 %v3376_v26  ;;  %v2865_v26 = vld [vmem:[%s3809_s4 + $0xc] sm:$0x3] }
 0x511   :  { %2162 = vmatprep.subr.bf16.mxu1 %v3381_v27  ;;  %v1724_v27 = vrot.slane %v2865_v26, %v3743_v21 }
 0x514   :  { %2163 = vmatpush1.bf16.msra.mxu1 %v3379_v28  ;;  %v1728_v28 = vrot.slane %v2865_v26, %v3748_v23 }
 0x515   :  { %2164 = vmatprep.subr.bf16.mxu1 %v3384_v29 }
 0x518   :  { %2165 = vmatpush1.bf16.msra.mxu1 %v3382_v30 }
 0x519   :  { %2166 = vmatprep.subr.bf16.mxu1 %v3387_v31 }
 0x51c   :  { %2167 = vmatpush1.bf16.msra.mxu1 %v3385_v32 }
 0x51d   :  { %2168 = vmatprep.subr.bf16.mxu1 %v3390_v33 }
 0x520   :  { %2169 = vmatpush1.bf16.msra.mxu1 %v3388_v34 }
 0x521   :  { %2170 = vmatprep.subr.bf16.mxu1 %v3393_v35 }
 0x524   :  { %2171 = vmatpush1.bf16.msra.mxu1 %v3391_v36 }
 0x525   :  { %2172 = vmatprep.subr.bf16.mxu1 %v3396_v37 }
 0x528   :  { %2173 = vmatpush1.bf16.msra.mxu1 %v3394_v38 }
 0x529   :  { %2174 = vmatprep.subr.bf16.mxu1 %v3399_v56  ;;  %v3460_v56 = vld [vmem:[#allocation11 + $0x20] sm:$0xff]  }
 0x52c   :  { %2175 = vmatpush1.bf16.msra.mxu1 %v3397_v57  ;;  %v3461_v57 = vld [vmem:[#allocation11 + $0x68] sm:$0xff]  }
 0x52d   :  { %2176 = vmatprep.subr.bf16.mxu1 %v3402_v58  ;;  %v3462_v58 = vld [vmem:[#allocation11 + $0x28] sm:$0xff]  }
 0x530   :  { %2177 = vmatpush1.bf16.msra.mxu1 %v3400_v59  ;;  %v2898_v59 = vld [vmem:[%s3809_s4 + $0xe] sm:$0x3] }
 0x531   :  { %v1983_v61 = vrot.slane %v2898_v59, %v3748_v23 }
 0x5c6   :  { %v1670_v42 = vpop.f32.mrb[8].mxu1 }
 0x5c7   :  { %v1671_v43 = vadd.f32 %v1670_v42, %v1469_v40  ;;  %v1672_v44 = vpop.f32.mrb[9].mxu1 }
 0x5c8   :  { %v1673_v45 = vadd.f32 %v1672_v44, %v1473_v41  ;;  %v1674_v46 = vpop.f32.mrb[10].mxu1  ;;  %v3445_v44 = vld [vmem:[#allocation9 + $0x7e0] ss:$8 sps:$4 sm:$0xff]  }
 0x5c9   :  { %v1675_v47 = vadd.f32 %v1674_v46, %v1469_v40  ;;  %v1676_v48 = vpop.f32.mrb[11].mxu1  ;;  %v1679_v50 = vmax.f32 %v1671_v43, 0.0  ;;  %v3447_v43 = vld [vmem:[#allocation9 + $0x7e4] ss:$8 sps:$4 sm:$0xff]   ;;  %v3448_v46 = vld [vmem:[#allocation9 + $0x7f0] ss:$8 sps:$4 sm:$0xff]  }
 0x5ca   :  { %v1677_v49 = vadd.f32 %v1676_v48, %v1473_v41  ;;  %v1680_v52 = vmax.f32 %v1673_v45, 0.0  ;;  %v3450_v45 = vld [vmem:[#allocation9 + $0x7f4] ss:$8 sps:$4 sm:$0xff]   ;;  %v3452_v48 = vld [vmem:[#allocation11] sm:$0xff]  }
 0x5cb   :  { %v1681_v51 = vmax.f32 %v1675_v47, 0.0  ;;  %v3451_v47 = vld [vmem:[#allocation11 + $0x40] sm:$0xff]  }
 0x5cc   :  { %v1682_v53 = vmax.f32 %v1677_v49, 0.0  ;;  %v3453_v49 = vld [vmem:[#allocation11 + $0x48] sm:$0xff]   ;;  %2983 = vmatprep.subr.bf16.mxu1 %v3451_v47 }
 0x5cd   :  { %v1683_v54 = vpack.c.bf16 %v1681_v51, %v1679_v50  ;;  %v3454_v50 = vld [vmem:[#allocation11 + $0x8] sm:$0xff]   ;;  %v3455_v51 = vld [vmem:[#allocation11 + $0x50] sm:$0xff]  }
 0x5ce   :  { %v1684_v55 = vpack.c.bf16 %v1682_v53, %v1680_v52  ;;  %v3456_v52 = vld [vmem:[#allocation11 + $0x10] sm:$0xff]   ;;  %v3457_v53 = vld [vmem:[#allocation11 + $0x58] sm:$0xff]  }
 0x5d0   :  { %1923 = vmatprep.mubr.bf16.mxu0 %v1684_v55  ;;  %v3459_v55 = vld [vmem:[#allocation11 + $0x60] sm:$0xff]  }
 0x5d1   :  { %1924 = vmatmul.mubr.bf16.vlgmr.msra.gmra.mrb[12].mxu0 %v1683_v54  ;;  %v3458_v54 = vld [vmem:[#allocation11 + $0x18] sm:$0xff]  }
 0x5d2   :  { %2402 = vmatpush1.bf16.msra.mxu0 %v3403_v60  ;;  %v1979_v60 = vrot.slane %v2898_v59, %v3743_v21 }
 0x5d3   :  { %2403 = vmatprep.subr.bf16.mxu0 %v3408_v62 }
 0x5d6   :  { %2404 = vmatpush1.bf16.msra.mxu0 %v3406_v63 }
 0x5d7   :  { %2405 = vmatprep.subr.bf16.mxu0 %v3411_v0 }
 0x5da   :  { %2406 = vmatpush1.bf16.msra.mxu0 %v3409_v2 }
 0x5db   :  { %2407 = vmatprep.subr.bf16.mxu0 %v3414_v3 }
 0x5de   :  { %2408 = vmatpush1.bf16.msra.mxu0 %v3412_v4 }
 0x5df   :  { %2409 = vmatprep.subr.bf16.mxu0 %v3417_v5 }
 0x5e2   :  { %2410 = vmatpush1.bf16.msra.mxu0 %v3415_v6 }
 0x5e3   :  { %2411 = vmatprep.subr.bf16.mxu0 %v3420_v7 }
 0x5e6   :  { %2412 = vmatpush1.bf16.msra.mxu0 %v3418_v8 }
 0x5e7   :  { %2413 = vmatprep.subr.bf16.mxu0 %v3423_v9 }
 0x5ea   :  { %2414 = vmatpush1.bf16.msra.mxu0 %v3421_v10 }
 0x5eb   :  { %2415 = vmatprep.subr.bf16.mxu0 %v3426_v11 }
 0x5ee   :  { %2416 = vmatpush1.bf16.msra.mxu0 %v3424_v12 }
 0x5ef   :  { %2417 = vmatprep.subr.bf16.mxu0 %v3429_v13  ;;  %v3463_v13 = vld [vmem:[#allocation11 + $0x70] sm:$0xff]  }
 0x5f2   :  { %2418 = vmatpush1.bf16.msra.mxu0 %v3427_v14  ;;  %v3464_v14 = vld [vmem:[#allocation11 + $0x30] sm:$0xff]  }
 0x5f3   :  { %2419 = vmatprep.subr.bf16.mxu0 %v3432_v1  ;;  %v3465_v1 = vld [vmem:[#allocation11 + $0x78] sm:$0xff]  }
 0x5f6   :  { %2420 = vmatpush1.bf16.msra.mxu0 %v3430_v15  ;;  %v3466_v15 = vld [vmem:[#allocation11 + $0x38] sm:$0xff]  }
 0x5f7   :  { %2421 = vmatprep.subr.bf16.mxu0 %v3435_v16  ;;  %v2931_v16 = vld [vmem:[%s3809_s4 + $0x10] sm:$0x3] }
 0x5fa   :  { %2422 = vmatpush1.bf16.msra.mxu0 %v3433_v17  ;;  %v2234_v17 = vrot.slane %v2931_v16, %v3743_v21  ;;  %v2964_v21 = vld [vmem:[%s3811_s6] ss:$0 sm:$0xff] }
 0x5fb   :  { %2423 = vmatprep.subr.bf16.mxu0 %v3438_v18 }
 0x5fe   :  { %2424 = vmatpush1.bf16.msra.mxu0 %v3436_v19  ;;  %v2238_v19 = vrot.slane %v2931_v16, %v3748_v23 }
 0x5ff   :  { %2425 = vmatprep.subr.bf16.mxu0 %v3441_v20 }
 0x602   :  { %2426 = vmatpush1.bf16.msra.mxu0 %v3439_v22 }
 0x603   :  { %2427 = vmatprep.subr.bf16.mxu0 %v3444_v24 }
 0x606   :  { %2428 = vmatpush1.bf16.msra.mxu0 %v3442_v25 }
 0x607   :  { %2429 = vmatprep.subr.bf16.mxu0 %v3447_v43  ;;  %v2982_v43 = vld [vmem:[#allocation3] ss:$0 sm:$0xff] }
 0x60a   :  { %2430 = vmatpush1.bf16.msra.mxu0 %v3445_v44 }
 0x60b   :  { %2431 = vmatprep.subr.bf16.mxu0 %v3450_v45 }
 0x60e   :  { %2432 = vmatpush1.bf16.msra.mxu0 %v3448_v46 }
 0x6a4   :  { %v1925_v29 = vpop.f32.mrb[12].mxu0 }
 0x6a5   :  { %v1926_v30 = vadd.f32 %v1925_v29, %v1724_v27  ;;  %v1927_v31 = vpop.f32.mrb[13].mxu0 }
 0x6a6   :  { %v1928_v32 = vadd.f32 %v1927_v31, %v1728_v28  ;;  %v1929_v33 = vpop.f32.mrb[14].mxu0 }
 0x6a7   :  { %v1930_v34 = vadd.f32 %v1929_v33, %v1724_v27  ;;  %v1931_v35 = vpop.f32.mrb[15].mxu0  ;;  %v1934_v37 = vmax.f32 %v1926_v30, 0.0 }
 0x6a8   :  { %v1932_v36 = vadd.f32 %v1931_v35, %v1728_v28  ;;  %v1935_v39 = vmax.f32 %v1928_v32, 0.0 }
 0x6a9   :  { %v1936_v38 = vmax.f32 %v1930_v34, 0.0 }
 0x6aa   :  { %v1937_v40 = vmax.f32 %v1932_v36, 0.0 }
 0x6ab   :  { %v1938_v41 = vpack.c.bf16 %v1936_v38, %v1934_v37  ;;  %v2981_v37 = vld [vmem:[%s3812_s7] ss:$0 sm:$0xff] }
 0x6ac   :  { %v1939_v42 = vpack.c.bf16 %v1937_v40, %v1935_v39 }
 0x6ae   :  { %2178 = vmatprep.mubr.bf16.mxu1 %v1939_v42 }
 0x6af   :  { %2179 = vmatmul.mubr.bf16.vlgmr.msra.gmra.mrb[12].mxu1 %v1938_v41 }
 0x6b0   :  { %2984 = vmatpush3.bf16.msra.mxu1 %v3452_v48 }
 0x6b1   :  { %2985 = vmatprep.subr.bf16.mxu1 %v3453_v49 }
 0x6b4   :  { %2986 = vmatpush3.bf16.msra.mxu1 %v3454_v50 }
 0x6b5   :  { %2987 = vmatprep.subr.bf16.mxu1 %v3455_v51 }
 0x6b8   :  { %2988 = vmatpush3.bf16.msra.mxu1 %v3456_v52 }
 0x6b9   :  { %2989 = vmatprep.subr.bf16.mxu1 %v3457_v53 }
 0x6bc   :  { %2990 = vmatpush3.bf16.msra.mxu1 %v3458_v54 }
 0x6bd   :  { %2991 = vmatprep.subr.bf16.mxu1 %v3459_v55 }
 0x6c0   :  { %2992 = vmatpush3.bf16.msra.mxu1 %v3460_v56 }
 0x6c1   :  { %2993 = vmatprep.subr.bf16.mxu1 %v3461_v57 }
 0x6c4   :  { %2994 = vmatpush3.bf16.msra.mxu1 %v3462_v58 }
 0x6c5   :  { %2995 = vmatprep.subr.bf16.mxu1 %v3463_v13 }
 0x6c8   :  { %2996 = vmatpush3.bf16.msra.mxu1 %v3464_v14 }
 0x6c9   :  { %2997 = vmatprep.subr.bf16.mxu1 %v3465_v1 }
 0x6cc   :  { %2998 = vmatpush3.bf16.msra.mxu1 %v3466_v15 }
 0x782   :  { %v2180_v62 = vpop.f32.mrb[12].mxu1 }
 0x783   :  { %v2181_v63 = vadd.f32 %v2180_v62, %v1979_v60  ;;  %v2182_v0 = vpop.f32.mrb[13].mxu1 }
 0x784   :  { %v2183_v2 = vadd.f32 %v2182_v0, %v1983_v61  ;;  %v2184_v3 = vpop.f32.mrb[14].mxu1 }
 0x785   :  { %v2185_v4 = vadd.f32 %v2184_v3, %v1979_v60  ;;  %v2186_v5 = vpop.f32.mrb[15].mxu1  ;;  %v2189_v7 = vmax.f32 %v2181_v63, 0.0 }
 0x786   :  { %v2187_v6 = vadd.f32 %v2186_v5, %v1983_v61  ;;  %v2190_v9 = vmax.f32 %v2183_v2, 0.0 }
 0x787   :  { %v2191_v8 = vmax.f32 %v2185_v4, 0.0 }
 0x788   :  { %v2192_v10 = vmax.f32 %v2187_v6, 0.0 }
 0x789   :  { %v2193_v11 = vpack.c.bf16 %v2191_v8, %v2189_v7 }
 0x78a   :  { %v2194_v12 = vpack.c.bf16 %v2192_v10, %v2190_v9 }
 0x78c   :  { %2433 = vmatprep.mubr.bf16.mxu0 %v2194_v12 }
 0x78d   :  { %2434 = vmatmul.mubr.bf16.vlgmr.msra.gmra.mrb[16].mxu0 %v2193_v11 }
 0x860   :  { %v2435_v18 = vpop.f32.mrb[16].mxu0 }
 0x861   :  { %v2437_v20 = vpop.f32.mrb[17].mxu0  ;;  %v2436_v24 = vadd.f32 %v2435_v18, %v2234_v17 }
 0x862   :  { %v2439_v22 = vpop.f32.mrb[18].mxu0  ;;  %v2438_v27 = vadd.f32 %v2437_v20, %v2238_v19 }
 0x863   :  { %v2440_v25 = vadd.f32 %v2439_v22, %v2234_v17  ;;  %v2441_v26 = vpop.f32.mrb[19].mxu0 }
 0x864   :  { %v2442_v28 = vadd.f32 %v2441_v26, %v2238_v19 }
 0x865   :  { %v2444_v29 = vpack.c.bf16 %v2440_v25, %v2436_v24 }
 0x866   :  { %v2445_v30 = vpack.c.bf16 %v2442_v28, %v2438_v27 }
 0x868   :  { %2613 = vmatprep.mubr.bf16.mxu1 %v2445_v30 }
 0x869   :  { %2614 = vmatmul.mubr.bf16.vlgmr.msra.gmra.mrb[16].mxu1 %v2444_v29 }
 0x93c   :  { %v2999_v31 = vpop.f32.mrb[16].mxu1 }
 0x93d   :  { %v3000_v32 = vpop.f32.mrb[17].mxu1 }
 0x93e   :  { %v3001_v33 = vadd.f32 %v3000_v32, %v2999_v31  ;;  %v3002_v34 = vpop.f32.mrb[18].mxu1 }
 0x93f   :  { %v3003_v23 = vpop.f32.mrb[19].mxu1 }
 0x940   :  { %v3004_v35 = vadd.f32 %v3003_v23, %v3002_v34  ;;  %v2616_v36 = vadd.f32 %v3001_v33, %v2964_v21 }
 0x942   :  { %v2619_v38 = vadd.f32 %v3004_v35, %v2964_v21  ;;  %v2622_v39 = vmax.f32 %v2616_v36, 0.0 }
 0x944   :  { %v2623_v40 = vmax.f32 %v2619_v38, 0.0  ;;  %v2631_v41 = vmul.f32 %v2981_v37, %v2622_v39 }
 0x946   :  { %2633 = vadd.xlane.f32.xlu0 %v2631_v41  ;;  %v2632_v42 = vmul.f32 %v2981_v37, %v2623_v40 }
 0x94a   :  { %2635 = vadd.xlane.f32.xlu0 %v2632_v42 }
 0x9d3   :  { %v2634_v44 = vpop.xlane.xlu0 %2633 }
 0x9d4   :  { %v2644_v45 = vadd.f32 %v2982_v43, %v2634_v44 }
 0x9d6   :  { %v2646_v46 = vsub.f32 0.0, %v2644_v45 }
 0x9d7   :  { %v2636_v47 = vpop.xlane.xlu0 %2635 }
 0x9d8   :  { %v2648_v48 = vmul.f32 1.442695, %v2646_v46  ;;  %v2645_v49 = vadd.f32 %v2982_v43, %v2636_v47 }
 0x9da   :  { %3467 = vpow2.f32 %v2648_v48  ;;  %v2647_v50 = vsub.f32 0.0, %v2645_v49 }
 0x9dc   :  { %v2650_v51 = vmul.f32 1.442695, %v2647_v50 }
 0x9de   :  { %3469 = vpow2.f32 %v2650_v51 }
 0x9e4   :  { %v3468_v52 = vpop.eup %3467 }
 0x9e5   :  { %v2652_v53 = vadd.f32 1.0, %v3468_v52 }
 0x9e7   :  { %3471 = vrcp.f32 %v2652_v53 }
 0x9e8   :  { %v3470_v54 = vpop.eup %3469 }
 0x9e9   :  { %v2653_v55 = vadd.f32 1.0, %v3470_v54 }
 0x9eb   :  { %3473 = vrcp.f32 %v2653_v55 }
 0x9f1   :  { %v3472_v56 = vpop.eup %3471 }
 0x9f2   :  { %2659 = vst.msk [vmem:[%s3814_s9] sm:$0xff] %vm2658_vm2, %v3472_v56 }
 0x9f5   :  { %v3474_v57 = vpop.eup %3473 }
 0x9f6   :  { %2660 = vst.msk [vmem:[%s3814_s9 + $0x8] sm:$0xff] %vm2658_vm2, %v3474_v57 }
 0x9f7   :  { %2665 = vsyncpa [#allocation5], 1 }
 0x9f8   :  { %2666 = vsyncpa [#allocation7], 1 }
 0x9f9   :  { %2667 = vsyncpa [#allocation10], 1 }

</bundles_post_ra>
